<compile_context>
chip_gen: v6e
topology: v6e:2x2x1
jax: 0.10.0
libtpu: 0.0.40
codegen_flags: <defaults>
</compile_context>

<pallas_src>
import jax
import jax.numpy as jnp
from jax import lax
from jax.experimental import pallas as pl
from jax.experimental.pallas import tpu as pltpu


def _stem_kernel(x_ref, w_ref, o_ref):
    # x_ref: (Cin, H+2, W+2)  f32 padded channels-first input, one batch element
    # w_ref: (Cout, 9*Cin)    f32 weights, tap-major / channel-minor columns
    # o_ref: (Cout, H*W)      f32 lane-dense output slab
    Cin, Hp2, Wp2 = x_ref.shape
    H, W = Hp2 - 2, Wp2 - 2

    # Build the fused im2col patch (9*Cin, H*W) in VMEM from 9 static ref
    # slices (no HBM im2col, no full-slab load). Row order is (dy, dx) major,
    # channel minor — matching the wrapper's weight reshape.
    taps = []
    for dy in range(3):
        for dx in range(3):
            taps.append(x_ref[:, dy:dy + H, dx:dx + W].reshape(Cin, H * W))
    patch = jnp.concatenate(taps, axis=0)                      # (9*Cin, H*W)

    # One MXU matmul, K = 9*Cin, computed directly in (Cout, H*W) orientation:
    # no accumulator transpose, H*W sits on the lane axis (unmasked store when
    # H*W is a multiple of 128 — true for the 16x16 test case).
    out = lax.dot_general(
        w_ref[...], patch,
        dimension_numbers=(((1,), (0,)), ((), ())),
        preferred_element_type=jnp.float32,
    )
    o_ref[...] = out.astype(o_ref.dtype)


def resnet_stem_forward(x_nchw, w_oihw):
    N, Cin, H, W = x_nchw.shape
    Cout, Cin_w, KH, KW = w_oihw.shape
    assert Cin_w == Cin and KH == 3 and KW == 3

    # Pad NCHW directly — channels-first feeds the kernel, no NHWC transpose.
    x_pad = jnp.pad(x_nchw, ((0, 0), (0, 0), (1, 1), (1, 1)))  # (N, Cin, H+2, W+2)

    # OIHW -> (Cout, 3, 3, Cin) -> (Cout, 9*Cin); columns match the kernel's
    # tap-major / channel-minor patch row ordering.
    w2 = jnp.transpose(w_oihw, (0, 2, 3, 1)).reshape(Cout, 9 * Cin)

    # NOTE: for spatial sizes where H*W % 128 != 0 (e.g. 14x14) the kernel is
    # still correct but the store becomes masked; pad the lane dim to a 128
    # multiple (and slice in the wrapper) if that matters. For real stem sizes
    # (224x224, Cout=64) add a row-band grid axis with a 2-row halo so the
    # double-buffered output block stays well under v7x's 64 MiB VMEM.
    out = pl.pallas_call(
        _stem_kernel,
        out_shape=jax.ShapeDtypeStruct((N, Cout, H * W), x_nchw.dtype),
        grid_spec=pltpu.PrefetchScalarGridSpec(
            num_scalar_prefetch=0,
            grid=(N,),
            in_specs=[
                pl.BlockSpec((None, Cin, H + 2, W + 2), lambda n: (n, 0, 0, 0)),
                pl.BlockSpec((Cout, 9 * Cin), lambda n: (0, 0)),
            ],
            out_specs=pl.BlockSpec((None, Cout, H * W), lambda n: (n, 0, 0)),
        ),
        compiler_params=pltpu.CompilerParams(
            # N=2 parallel keeps both v7x TensorCores busy; harmless (no-op)
            # on single-TC v5e/v6e at this size.
            dimension_semantics=("parallel",),
        ),
    )(x_pad, w2)

    # (N, Cout, H*W) -> NCHW via pure reshape (no transpose pass).
    return out.reshape(N, Cout, H, W)


if __name__ == "__main__":
    key = jax.random.PRNGKey(0)
    kx, kw = jax.random.split(key)

    # Module defaults: Cin=3, Cout=16; small spatial/batch.
    N, Cin, H, W, Cout = 2, 3, 16, 16, 16
    x = jax.random.normal(kx, (N, Cin, H, W), dtype=jnp.float32)

    # Deterministic Conv2d weight init (kaiming-uniform-style bound, bias=False).
    fan_in = Cin * 3 * 3
    bound = (1.0 / fan_in) ** 0.5
    w = jax.random.uniform(
        kw, (Cout, Cin, 3, 3), minval=-bound, maxval=bound, dtype=jnp.float32
    )

    y = jax.block_until_ready(resnet_stem_forward(x, w))

    # Reference with identical semantics (NCHW, OIHW, stride 1, pad 1).
    y_ref = jax.lax.conv_general_dilated(
        x, w, window_strides=(1, 1), padding=((1, 1), (1, 1)),
        dimension_numbers=("NCHW", "OIHW", "NCHW"),
    )
    assert y.shape == (N, Cout, H, W)
    # f32 operands + f32 accumulation; tolerance covers MXU pass-decomposition
    # differences between the Pallas dot and XLA's conv at default precision.
    assert jnp.allclose(y, y_ref, atol=2e-2, rtol=2e-2)

    print("KERNEL_OK")
</pallas_src>

<mosaic_0001>
module attributes {stable_mosaic.version = 11 : i64} {
  func.func @_stem_kernel(%arg0: i32, %arg1: memref<1x3x18x18xf32, #tpu.memory_space<vmem>>, %arg2: memref<16x27xf32, #tpu.memory_space<vmem>>, %arg3: memref<1x16x256xf32, #tpu.memory_space<vmem>>) attributes {dimension_semantics = [#tpu.dimension_semantics<parallel>], iteration_bounds = array<i64: 2>, scalar_prefetch = 0 : i64, scratch_operands = 0 : i64, tpu.core_type = #tpu.core_type<tc>, window_params = [{transform_indices = @transform_0, window_bounds = array<i64: 1, 3, 18, 18>}, {pipeline_mode = #tpu.pipeline_mode<synchronous>, transform_indices = @transform_1, window_bounds = array<i64: 16, 27>}, {transform_indices = @transform_2, window_bounds = array<i64: 1, 16, 256>}]} {
    %c0 = arith.constant 0 : index
    %c0_0 = arith.constant 0 : index
    %c0_1 = arith.constant 0 : index
    %c0_2 = arith.constant 0 : index
    %0 = vector.load %arg1[%c0, %c0_0, %c0_1, %c0_2] : memref<1x3x18x18xf32, #tpu.memory_space<vmem>>, vector<1x3x16x16xf32>
    %1 = vector.shape_cast %0 : vector<1x3x16x16xf32> to vector<3x16x16xf32>
    %2 = vector.shape_cast %1 : vector<3x16x16xf32> to vector<3x256xf32>
    %c0_3 = arith.constant 0 : index
    %c0_4 = arith.constant 0 : index
    %c0_5 = arith.constant 0 : index
    %c1 = arith.constant 1 : index
    %3 = vector.load %arg1[%c0_3, %c0_4, %c0_5, %c1] : memref<1x3x18x18xf32, #tpu.memory_space<vmem>>, vector<1x3x16x16xf32>
    %4 = vector.shape_cast %3 : vector<1x3x16x16xf32> to vector<3x16x16xf32>
    %5 = vector.shape_cast %4 : vector<3x16x16xf32> to vector<3x256xf32>
    %c0_6 = arith.constant 0 : index
    %c0_7 = arith.constant 0 : index
    %c0_8 = arith.constant 0 : index
    %c2 = arith.constant 2 : index
    %6 = vector.load %arg1[%c0_6, %c0_7, %c0_8, %c2] : memref<1x3x18x18xf32, #tpu.memory_space<vmem>>, vector<1x3x16x16xf32>
    %7 = vector.shape_cast %6 : vector<1x3x16x16xf32> to vector<3x16x16xf32>
    %8 = vector.shape_cast %7 : vector<3x16x16xf32> to vector<3x256xf32>
    %c0_9 = arith.constant 0 : index
    %c0_10 = arith.constant 0 : index
    %c1_11 = arith.constant 1 : index
    %c0_12 = arith.constant 0 : index
    %9 = vector.load %arg1[%c0_9, %c0_10, %c1_11, %c0_12] : memref<1x3x18x18xf32, #tpu.memory_space<vmem>>, vector<1x3x16x16xf32>
    %10 = vector.shape_cast %9 : vector<1x3x16x16xf32> to vector<3x16x16xf32>
    %11 = vector.shape_cast %10 : vector<3x16x16xf32> to vector<3x256xf32>
    %c0_13 = arith.constant 0 : index
    %c0_14 = arith.constant 0 : index
    %c1_15 = arith.constant 1 : index
    %c1_16 = arith.constant 1 : index
    %12 = vector.load %arg1[%c0_13, %c0_14, %c1_15, %c1_16] : memref<1x3x18x18xf32, #tpu.memory_space<vmem>>, vector<1x3x16x16xf32>
    %13 = vector.shape_cast %12 : vector<1x3x16x16xf32> to vector<3x16x16xf32>
    %14 = vector.shape_cast %13 : vector<3x16x16xf32> to vector<3x256xf32>
    %c0_17 = arith.constant 0 : index
    %c0_18 = arith.constant 0 : index
    %c1_19 = arith.constant 1 : index
    %c2_20 = arith.constant 2 : index
    %15 = vector.load %arg1[%c0_17, %c0_18, %c1_19, %c2_20] : memref<1x3x18x18xf32, #tpu.memory_space<vmem>>, vector<1x3x16x16xf32>
    %16 = vector.shape_cast %15 : vector<1x3x16x16xf32> to vector<3x16x16xf32>
    %17 = vector.shape_cast %16 : vector<3x16x16xf32> to vector<3x256xf32>
    %c0_21 = arith.constant 0 : index
    %c0_22 = arith.constant 0 : index
    %c2_23 = arith.constant 2 : index
    %c0_24 = arith.constant 0 : index
    %18 = vector.load %arg1[%c0_21, %c0_22, %c2_23, %c0_24] : memref<1x3x18x18xf32, #tpu.memory_space<vmem>>, vector<1x3x16x16xf32>
    %19 = vector.shape_cast %18 : vector<1x3x16x16xf32> to vector<3x16x16xf32>
    %20 = vector.shape_cast %19 : vector<3x16x16xf32> to vector<3x256xf32>
    %c0_25 = arith.constant 0 : index
    %c0_26 = arith.constant 0 : index
    %c2_27 = arith.constant 2 : index
    %c1_28 = arith.constant 1 : index
    %21 = vector.load %arg1[%c0_25, %c0_26, %c2_27, %c1_28] : memref<1x3x18x18xf32, #tpu.memory_space<vmem>>, vector<1x3x16x16xf32>
    %22 = vector.shape_cast %21 : vector<1x3x16x16xf32> to vector<3x16x16xf32>
    %23 = vector.shape_cast %22 : vector<3x16x16xf32> to vector<3x256xf32>
    %c0_29 = arith.constant 0 : index
    %c0_30 = arith.constant 0 : index
    %c2_31 = arith.constant 2 : index
    %c2_32 = arith.constant 2 : index
    %24 = vector.load %arg1[%c0_29, %c0_30, %c2_31, %c2_32] : memref<1x3x18x18xf32, #tpu.memory_space<vmem>>, vector<1x3x16x16xf32>
    %25 = vector.shape_cast %24 : vector<1x3x16x16xf32> to vector<3x16x16xf32>
    %26 = vector.shape_cast %25 : vector<3x16x16xf32> to vector<3x256xf32>
    %27 = tpu.concatenate %2, %5, %8, %11, %14, %17, %20, %23, %26 in 0 : vector<3x256xf32>, vector<3x256xf32>, vector<3x256xf32>, vector<3x256xf32>, vector<3x256xf32>, vector<3x256xf32>, vector<3x256xf32>, vector<3x256xf32>, vector<3x256xf32> -> vector<27x256xf32>
    %c0_33 = arith.constant 0 : index
    %c0_34 = arith.constant 0 : index
    %28 = vector.load %arg2[%c0_33, %c0_34] : memref<16x27xf32, #tpu.memory_space<vmem>>, vector<16x27xf32>
    %cst = arith.constant dense<0.000000e+00> : vector<16x256xf32>
    %29 = tpu.matmul %28, %27, %cst {dimension_numbers = #tpu.dot_dimension_numbers<[1], [0], [0], [1], [0, 0, 1, 1], [], []>} : vector<16x27xf32>, vector<27x256xf32>, vector<16x256xf32> -> vector<16x256xf32>
    %c0_35 = arith.constant 0 : index
    %c0_36 = arith.constant 0 : index
    %c0_37 = arith.constant 0 : index
    %30 = vector.load %arg3[%c0_35, %c0_36, %c0_37] : memref<1x16x256xf32, #tpu.memory_space<vmem>>, vector<1x16x256xf32>
    %31 = vector.shape_cast %30 : vector<1x16x256xf32> to vector<16x256xf32>
    %32 = vector.shape_cast %29 : vector<16x256xf32> to vector<1x16x256xf32>
    tpu.vector_store %arg3[%c0_35, %c0_36, %c0_37], %32 {strides = array<i32>} : memref<1x16x256xf32, #tpu.memory_space<vmem>>, vector<1x16x256xf32>,
    return
  }
  func.func @transform_0(%arg0: i32) -> (i32, i32, i32, i32) {
    %c0_i32 = arith.constant 0 : i32
    %c0_i32_0 = arith.constant 0 : i32
    %c0_i32_1 = arith.constant 0 : i32
    %c0_i32_2 = arith.constant 0 : i32
    return %arg0, %c0_i32, %c0_i32_0, %c0_i32_1 : i32, i32, i32, i32
  }
  func.func @transform_1(%arg0: i32) -> (i32, i32) {
    %c0_i32 = arith.constant 0 : i32
    %c0_i32_0 = arith.constant 0 : i32
    %c0_i32_1 = arith.constant 0 : i32
    return %c0_i32, %c0_i32_0 : i32, i32
  }
  func.func @transform_2(%arg0: i32) -> (i32, i32, i32) {
    %c0_i32 = arith.constant 0 : i32
    %c0_i32_0 = arith.constant 0 : i32
    %c0_i32_1 = arith.constant 0 : i32
    return %arg0, %c0_i32, %c0_i32_0 : i32, i32, i32
  }
}

</mosaic_0001>

<bundles_post_ra>
// kernel: tpu_custom_call.1
= control target key start
LH: loop header
LB: loop body
LE: loop exit
PB: predicated region body
PF: predicated region fallthrough
CT: control target
= control target key end

     0   :  { %7 = vsyncpa [#allocation3], 0  ;;  %s4168_s0 = inlined_call_operand.vmem [shape: f32[2,3,18,18], index: 0, kind: input, shape index: {}]   ;;  %s4169_s1 = inlined_call_operand.vmem [shape: f32[16,27], index: 1, kind: input, shape index: {}]   ;;  %s4170_s2 = inlined_call_operand.hbm [shape: f32[2,16,256], index: 2, kind: output, shape index: {}]  }
   0x1   :  { %9 = vsyncpa [#allocation3 + $0x1], 0  ;;  %s2544_s9 = smov 0   ;;  %s2546_s10 = smov 0  }
   0x2   :  { %s2548_s11 = smov 0   ;;  %s2550_s12 = smov 0  }
   0x3 LB: > { %s2565_s13 = sadd.s32 4294967295, %s2513_s12   ;;  %s2364_s14 = sadd.s32 4294967294, %s2513_s12   ;;  %s2513_s12 = sphi %s2550_s12, %s4342_s12   ;;  %s2509_s11 = sphi %s2548_s11, %s4341_s11   ;;  %s2505_s10 = sphi %s2546_s10, %s4340_s10   ;;  %s2501_s9 = sphi %s2544_s9, %s4339_s9  }
   0x4   : > { %s2569_s15 = sadd.s32 1, %s2513_s12   ;;  %s69_s16 = sadd.s32 1, %s2509_s11 }
   0x5   : > { %s66_s17 = ssub.s32 %s2513_s12, %s2569_s15  ;;  %p79_p0 = scmp.ne.s32.totalorder %s2509_s11, %s2505_s10 }
   0x6   : > { %p67_p1 = scmp.eq.s32.totalorder %s66_s17, 0  ;;  %p80_p2 = scmp.eq.s32.totalorder %s2565_s13, 1 }
   0x7   : > { %p85_p3 = scmp.ne.s32.totalorder %s2505_s10, %s2501_s9  ;;  %p86_p4 = scmp.eq.s32.totalorder %s2364_s14, 1 }
   0x8   : > { %s2580_s18 = scalar_select %p67_p1, %s2509_s11, %s69_s16  }
   0x9   : > { %p2582_p5 = por %p80_p2, %p79_p0  ;;  %p2586_p6 = por %p86_p4, %p85_p3 }
   0xa   : > { %p2367_p7 = scmp.ge.s32.totalorder %s2513_s12, 1  ;;  %p115_p8 = scmp.lt.s32.totalorder %s2513_s12, 3 }
   0xc   : > { %p116_p9 = pnand %p2367_p7, %p115_p8 }
   0xe   : > { %119 = sbr.rel (%p116_p9) target bundleno = 750 (0x2ee), region = 28 }
  0x13   : > { %p137_p10 = scmp.lt.s32.totalorder %s2565_s13, 1  ;;  %v4171_v0 = vmov 0.0   ;;  %v2516_v1 = vmov 1983009808   ;;  %v153_v3 = vlaneseq  ;;  %s2517_s26 = smov 126   ;;  %vm338_vm0 = vcmask 130048  }
  0x14   : > { %2271 = vmatprep.mubr.f32.mxu0 %v4171_v0  ;;  %2277 = vmatprep.mubr.f32.mxu1 %v4171_v0  ;;  %v151_v2 = vunpack.c.l.s4 %v2516_v1  ;;  %s2518_s27 = smov 127   ;;  %v2519_v41 = vmov 1934713408   ;;  %s2520_s28 = smov 16   ;;  %vm340_vm1 = vcmask 261120   ;;  %vm342_vm2 = vcmask 392192  }
  0x15   : > { %s138_s21 = scalar_select %p137_p10, %s2565_s13, 1  ;;  %v2601_v5 = vshrl.u32 %v153_v3, 7  ;;  %v182_v42 = vunpack.c.l.s4 %v2519_v41  ;;  %vm344_vm3 = vcmask 523264   ;;  %vm346_vm4 = vcmask 654336  }
  0x16   : > { %v152_v4 = vunpack.c.0.s8 %v151_v2  ;;  %s2521_s29 = smov 32   ;;  %s2522_s30 = smov 48   ;;  %vm348_vm5 = vcmask 785408   ;;  %vm350_vm6 = vcmask 916480   ;;  %vm2186_vm7 = vcmask 1041408  }
  0x17   : > { %s2388_s22 = smul.u32 72, %s138_s21  ;;  %v183_v49 = vunpack.c.0.s8 %v182_v42  ;;  %s2523_s3 = smov 64   ;;  %vm2177_vm8 = vcmask 1040384   ;;  %vm2189_vm9 = vcmask 1044480   ;;  %vm2171_vm10 = vcmask 1042432  }
  0x18   : > { %v2635_v16 = vsub.s32 %v152_v4, %v2601_v5  ;;  %s2524_s4 = smov 80   ;;  %s2525_s5 = smov 96   ;;  %vm2180_vm11 = vcmask 1043456   ;;  %vm2183_vm12 = vcmask 1046528   ;;  %vm2174_vm13 = vcmask 1045504  }
  0x19   : > { %s2599_s25 = scalar_lea.vmem %s4168_s0, %s2388_s22  ;;  %v2771_v52 = vsub.s32 %v183_v49, %v2601_v5  ;;  %s2526_s6 = smov 112   ;;  %vm2194_vm14 = vcmask 220160  }
  0x1a   : > { %v2604_v6 = vld [vmem:[%s2599_s25 + $0x9] sm:$0xff]  ;;  %v2610_v8 = vld [vmem:[%s2599_s25 + $0x39] sm:$0xff]  ;;  %v2626_v13 = vld [vmem:[%s2599_s25 + $0x1] sm:$0xff]  ;;  %s134_s17 = sand.u32 1, %s2505_s10   ;;  %s2379_s24 = sshll.u32 %s2565_s13, 9 }
  0x1b   : > { %v2607_v7 = vld [vmem:[%s2599_s25 + $0x8] sm:$0xff]  ;;  %1249 = vrot.lane.b32.xlu0 %v2604_v6, %s2517_s26  ;;  %v2619_v10 = vld [vmem:[%s2599_s25 + $0x38] sm:$0xff]  ;;  %v2645_v20 = vld [vmem:[%s2599_s25 + $0x30] sm:$0xff]  ;;  %v882_v44 = vcombine.low %v2604_v6, %v2610_v8  ;;  %s2368_s21 = sshll.u32 %s134_s17, 5 }
  0x1c   : > { %589 = vrot.lane.b32.xlu1 %v2607_v7, %s2517_s26  ;;  %4222 = vst [vmem:[#allocation5_spill] sm:$0xff] %v2619_v10  ;;  %v215_v11 = vcombine.low %v2607_v7, %v2619_v10  ;;  %v2629_v14 = vld [vmem:[%s2599_s25 + $0x31] sm:$0xff]  ;;  %v2642_v19 = vld [vmem:[%s2599_s25 + $0x3a] sm:$0xff]  ;;  %4223 = vst [vmem:[#allocation6_spill] sm:$0xff] %v2645_v20  ;;  %s136_s22 = scalar_lea.vmem [#allocation2], %s2368_s21 }
  0x1d   : > { %v2632_v15 = vld [vmem:[%s2599_s25 + $0xa] sm:$0xff]  ;;  %v815_v17 = vcombine.low %v2626_v13, %v2629_v14  ;;  %v816_v18 = vcombine.high %v2626_v13, %v2629_v14  ;;  %v2648_v21 = vld [vmem:[%s2599_s25] sm:$0xff]  ;;  %v2667_v27 = vld [vmem:[%s2599_s25 + $0x32] sm:$0xff]  ;;  %v890_v50 = vrot.slane %v882_v44, %v2635_v16  ;;  %s2302_s23 = sshll.u32 %s136_s22, 4  ;;  %s4120_s23 = int_to_ptr.vmem [resolvable:$true] %s2302_s23 }
  0x1e   : > { %4224 = vst [vmem:[#allocation7_spill] sm:$0xff] %v2648_v21  ;;  %v1543_v22 = vcombine.high %v2632_v15, %v2642_v19  ;;  %v148_v23 = vcombine.low %v2648_v21, %v2645_v20  ;;  %v2659_v24 = vrot.slane %v215_v11, %v2635_v16  ;;  %v2664_v26 = vld [vmem:[%s2599_s25 + $0x2] sm:$0xff]  ;;  %v2688_v33 = vld [vmem:[%s2599_s25 + $0x18] sm:$0xff]  ;;  %v1542_v39 = vcombine.low %v2632_v15, %v2642_v19  ;;  %s2453_s13 = scalar_lea.vmem %s4120_s23, 512 }
  0x1f   : > { %1257 = vrot.lane.b32.xlu0 %v2610_v8, %s2517_s26  ;;  %v2670_v28 = vld [vmem:[%s2599_s25 + $0x20] sm:$0xff]  ;;  %v1476_v29 = vcombine.high %v2664_v26, %v2667_v27  ;;  %4225 = vst [vmem:[#allocation8_spill] sm:$0xff] %v2688_v33  ;;  %v2692_v34 = vrot.slane %v2688_v33, %v2635_v16  ;;  %v1475_v40 = vcombine.low %v2664_v26, %v2667_v27  ;;  %p2454_p11 = scmp.ne.s32.totalorder %s4120_s23, %s2453_s13 }
  0x20   : > { %597 = vrot.lane.b32.xlu1 %v2619_v10, %s2517_s26  ;;  %v2676_v30 = vrot.slane %v2670_v28, %v2635_v16  ;;  %v2679_v31 = vrot.slane %v148_v23, %v2635_v16  ;;  %v2709_v36 = vld [vmem:[%s2599_s25 + $0x21] sm:$0xff]  ;;  %v2729_v38 = vld [vmem:[%s2599_s25 + $0x19] sm:$0xff]  ;;  %v1550_v45 = vrot.slane %v1542_v39, %v2635_v16  ;;  %v823_v58 = vrot.slane %v815_v17, %v2635_v16 }
  0x21   : > { %v1472_v37 = vld [vmem:[%s2599_s25 + $0x22] sm:$0xff]  ;;  %v2751_v43 = vld [vmem:[%s2599_s25 + $0x1a] sm:$0xff]  ;;  %v1483_v46 = vrot.slane %v1475_v40, %v2635_v16  ;;  %v905_v51 = vrot.slane %v2709_v36, %v2635_v16  ;;  %v838_v59 = vrot.slane %v2729_v38, %v2635_v16  ;;  %p2455_p12 = pnand %p2454_p11, %p2582_p5 }
  0x22   : > { %v1565_v47 = vrot.slane %v1472_v37, %v2635_v16  ;;  %v1498_v48 = vrot.slane %v2751_v43, %v2635_v16  ;;  %v1558_v1 = vcombine.high %v1472_v37, %v4171_v0 }
  0x23   : > { %1247 = vrot.lane.b32.xlu0 %v2626_v13, %s2517_s26  ;;  %v913_v55 = vcombine.low %v890_v50, %v905_v51  ;;  %v914_v63 = vcombine.high %v890_v50, %v905_v51  ;;  %v846_v4 = vcombine.low %v823_v58, %v838_v59  ;;  %p2456_p13 = pneg %p2455_p12 }
  0x24   : > { %1255 = vrot.lane.b32.xlu1 %v2629_v14, %s2517_s26  ;;  %v1573_v53 = vcombine.low %v1550_v45, %v1565_v47  ;;  %v1506_v54 = vcombine.low %v1483_v46, %v1498_v48  ;;  %v1574_v2 = vcombine.high %v1550_v45, %v1565_v47  ;;  %v1507_v11 = vcombine.high %v1483_v46, %v1498_v48 }
  0x25   : > { %v2790_v60 = vrot.slane %v913_v55, %v2771_v52  ;;  %v928_v5 = vrot.slane %v914_v63, %v2771_v52  ;;  %v2809_v23 = vrot.slane %v846_v4, %v2771_v52  ;;  %v2819_v39 = vrot.slane %v1558_v1, %v2635_v16 }
  0x26   : > { %v2778_v56 = vrot.slane %v1573_v53, %v2771_v52  ;;  %v2781_v57 = vrot.slane %v1506_v54, %v2771_v52  ;;  %v1588_v17 = vrot.slane %v1574_v2, %v2771_v52  ;;  %v1521_v40 = vrot.slane %v1507_v11, %v2771_v52 }
  0x27   : > { %1687 = vrot.lane.b32.xlu0 %v2632_v15, %s2518_s27  ;;  %4228 = vst [vmem:[#allocation11_spill] sm:$0xff] %v2790_v60  ;;  %v945_v3 = vcombine.high %v2790_v60, %v4171_v0  ;;  %4229 = vst [vmem:[#allocation12_spill] sm:$0xff] %v2809_v23  ;;  %v878_v41 = vcombine.high %v2809_v23, %v4171_v0  ;;  %v946_v42 = vcombine.high %v928_v5, %v4171_v0 }
  0x28   : > { %1695 = vrot.lane.b32.xlu1 %v2642_v19, %s2518_s27  ;;  %4226 = vst [vmem:[#allocation9_spill] sm:$0xff] %v2778_v56  ;;  %4227 = vst [vmem:[#allocation10_spill] sm:$0xff] %v2781_v57  ;;  %v1605_v61 = vcombine.high %v2778_v56, %v4171_v0  ;;  %v1538_v62 = vcombine.high %v2781_v57, %v4171_v0  ;;  %v1539_v46 = vcombine.high %v1521_v40, %v4171_v0 }
  0x29   : > { %4231 = vst [vmem:[#allocation14_spill] sm:$0xff] %v2819_v39  ;;  %v1491_v47 = vcombine.high %v2751_v43, %v4171_v0  ;;  %v2851_v48 = vrot.slane %v1476_v29, %v2635_v16  ;;  %v831_v54 = vcombine.high %v2729_v38, %v4171_v0 }
  0x2b   : > { %587 = vrot.lane.b32.xlu0 %v2648_v21, %s2517_s26  ;;  %4232 = vst [vmem:[#allocation15_spill] sm:$0xff] %v2851_v48  ;;  %v2854_v49 = vrot.slane %v1491_v47, %v2635_v16 }
  0x2c   : > { %595 = vrot.lane.b32.xlu1 %v2645_v20, %s2517_s26 }
  0x2d   : > { %4233 = vst [vmem:[#allocation16_spill] sm:$0xff] %v2854_v49 }
  0x2f   : > { %1027 = vrot.lane.b32.xlu0 %v2604_v6, %s2518_s27 }
  0x30   : > { %1035 = vrot.lane.b32.xlu1 %v2610_v8, %s2518_s27 }
  0x33   : > { %1253 = vrot.lane.b32.xlu0 %v2709_v36, %s2517_s26 }
  0x34   : > { %1685 = vrot.lane.b32.xlu1 %v2664_v26, %s2518_s27 }
  0x37   : > { %1693 = vrot.lane.b32.xlu0 %v2667_v27, %s2518_s27 }
  0x38   : > { %1909 = vrot.lane.b32.xlu1 %v2632_v15, %s2517_s26  ;;  %v1606_v15 = vcombine.high %v1588_v17, %v4171_v0 }
  0x3b   : > { %1917 = vrot.lane.b32.xlu0 %v2642_v19, %s2517_s26  ;;  %v847_v19 = vcombine.high %v823_v58, %v838_v59 }
  0x3c   : > { %593 = vrot.lane.b32.xlu1 %v2670_v28, %s2517_s26 }
  0x3d   : > { %v2837_v45 = vrot.slane %v847_v19, %v2771_v52 }
  0x3f   : > { %1025 = vrot.lane.b32.xlu0 %v2626_v13, %s2518_s27 }
  0x40   : > { %1033 = vrot.lane.b32.xlu1 %v2629_v14, %s2518_s27 }
  0x43   : > { %1251 = vrot.lane.b32.xlu0 %v2729_v38, %s2517_s26 }
  0x44   : > { %1691 = vrot.lane.b32.xlu1 %v1472_v37, %s2518_s27 }
  0x47   : > { %1907 = vrot.lane.b32.xlu0 %v2664_v26, %s2517_s26  ;;  %v2868_v26 = vrot.slane %v816_v18, %v2635_v16 }
  0x48   : > { %1915 = vrot.lane.b32.xlu1 %v2667_v27, %s2517_s26  ;;  %v2871_v27 = vrot.slane %v831_v54, %v2635_v16 }
  0x4b   : > { %367 = vrot.lane.b32.xlu0 %v2607_v7, %s2518_s27 }
  0x4c   : > { %375 = vrot.lane.b32.xlu1 %v2619_v10, %s2518_s27 }
  0x4f   : > { %591 = vrot.lane.b32.xlu0 %v2688_v33, %s2517_s26 }
  0x50   : > { %1031 = vrot.lane.b32.xlu1 %v2709_v36, %s2518_s27 }
  0x53   : > { %1689 = vrot.lane.b32.xlu0 %v2751_v43, %s2518_s27 }
  0x54   : > { %1913 = vrot.lane.b32.xlu1 %v1472_v37, %s2517_s26  ;;  %v2816_v37 = vrot.slane %v1543_v22, %v2635_v16 }
  0x56   : > { %4230 = vst [vmem:[#allocation13_spill] sm:$0xff] %v2816_v37  ;;  %v1589_v44 = vcombine.low %v2816_v37, %v2819_v39 }
  0x57   : > { %365 = vrot.lane.b32.xlu0 %v2648_v21, %s2518_s27 }
  0x58   : > { %373 = vrot.lane.b32.xlu1 %v2645_v20, %s2518_s27  ;;  %v2833_v22 = vrot.slane %v1589_v44, %v2771_v52  ;;  %v4241_v20 = vmov 0.0  }
  0x5b   : > { %1029 = vrot.lane.b32.xlu0 %v2729_v38, %s2518_s27 }
  0x5c   : > { %1911 = vrot.lane.b32.xlu1 %v2751_v43, %s2517_s26 }
  0x5f   : > { %371 = vrot.lane.b32.xlu0 %v2670_v28, %s2518_s27 }
  0x60   : > { %369 = vrot.lane.b32.xlu1 %v2688_v33, %s2518_s27  ;;  %s4125_s27 = scalar_lea.hbm %s4170_s2, %s2379_s24 }
  0x63   : > { %1610 = vrot.lane.b32.xlu0 %v1538_v62, %s2520_s28 }
  0x64   : > { %1638 = vrot.lane.b32.xlu1 %v1605_v61, %s2520_s28 }
  0x67   : > { %982 = vrot.lane.b32.xlu0 %v928_v5, %s2521_s29 }
  0x68   : > { %978 = vrot.lane.b32.xlu1 %v945_v3, %s2520_s28 }
  0x6b   : > { %1614 = vrot.lane.b32.xlu0 %v1521_v40, %s2521_s29 }
  0x6c   : > { %1642 = vrot.lane.b32.xlu1 %v1588_v17, %s2521_s29 }
  0x6f   : > { %986 = vrot.lane.b32.xlu0 %v946_v42, %s2522_s30 }
  0x70   : > { %950 = vrot.lane.b32.xlu1 %v878_v41, %s2520_s28 }
  0x73   : > { %1650 = vrot.lane.b32.xlu0 %v2833_v22, %s2523_s3 }
  0x74   : > { %1646 = vrot.lane.b32.xlu1 %v1606_v15, %s2522_s30 }
  0x78   : > { %954 = vrot.lane.b32.xlu1 %v2837_v45, %s2521_s29 }
  0x7c   : > { %1618 = vrot.lane.b32.xlu1 %v1539_v46, %s2522_s30 }
  0x8d   : > { %v1250_v51 = vpop.permute.xlu0 %1249 }
  0x8e   : > { %v590_v53 = vpop.permute.xlu1 %589 }
  0x91   : > { %v1258_v55 = vpop.permute.xlu0 %1257 }
  0x92   : > { %v598_v58 = vpop.permute.xlu1 %597  ;;  %v1332_v3 = vcombine.low %v1250_v51, %v1258_v55  ;;  %v1333_v13 = vcombine.high %v1250_v51, %v1258_v55 }
  0x93   : > { %v672_v15 = vcombine.low %v590_v53, %v598_v58  ;;  %v673_v47 = vcombine.high %v590_v53, %v598_v58 }
  0x94   : > { %v2886_v4 = vrot.slane %v1332_v3, %v2635_v16  ;;  %v2898_v41 = vrot.slane %v1333_v13, %v2635_v16 }
  0x95   : > { %v2860_v43 = vpop.permute.xlu0 %1247  ;;  %v2914_v55 = vrot.slane %v672_v15, %v2635_v16 }
  0x96   : > { %v2862_v59 = vpop.permute.xlu1 %1255  ;;  %4238 = vst [vmem:[#allocation21_spill] sm:$0xff] %v2898_v41 }
  0x99   : > { %v1688_v61 = vpop.permute.xlu0 %1687 }
  0x9a   : > { %v1696_v38 = vpop.permute.xlu1 %1695 }
  0x9b   : > { %v1770_v15 = vcombine.low %v1688_v61, %v1696_v38  ;;  %v1771_v32 = vcombine.high %v1688_v61, %v1696_v38 }
  0x9d   : > { %v2877_v63 = vpop.permute.xlu0 %587  ;;  %v2944_v29 = vrot.slane %v1770_v15, %v2635_v16  ;;  %v2958_v38 = vrot.slane %v1771_v32, %v2635_v16 }
  0x9e   : > { %v2875_v62 = vpop.permute.xlu1 %595  ;;  %4235 = vst [vmem:[#allocation18_spill] sm:$0xff] %v2877_v63 }
  0x9f   : > { %4234 = vst [vmem:[#allocation17_spill] sm:$0xff] %v2875_v62 }
  0xa1   : > { %v2881_v2 = vpop.permute.xlu0 %1027 }
  0xa2   : > { %v2879_v1 = vpop.permute.xlu1 %1035 }
  0xa5   : > { %v1254_v18 = vpop.permute.xlu0 %1253 }
  0xa6   : > { %v2883_v14 = vpop.permute.xlu1 %1685  ;;  %v1348_v5 = vcombine.high %v1254_v18, %v4171_v0  ;;  %v2890_v11 = vrot.slane %v1254_v18, %v2635_v16  ;;  %v2921_v18 = vrot.slane %v673_v47, %v2635_v16  ;;  %v1265_v47 = vcombine.low %v2860_v43, %v2862_v59 }
  0xa7   : > { %4236 = vst [vmem:[#allocation19_spill] sm:$0xff] %v2883_v14 }
  0xa8   : > { %v2893_v17 = vrot.slane %v1348_v5, %v2635_v16  ;;  %v1364_v40 = vcombine.high %v2886_v4, %v2890_v11  ;;  %v2955_v61 = vrot.slane %v1265_v47, %v2635_v16  ;;  %v1111_v47 = vcombine.high %v2881_v2, %v2879_v1 }
  0xa9   : > { %v2902_v44 = vpop.permute.xlu0 %1693 }
  0xaa   : > { %4237 = vst [vmem:[#allocation20_spill] sm:$0xff] %v2893_v17  ;;  %v2900_v42 = vpop.permute.xlu1 %1909  ;;  %4239 = vst [vmem:[#allocation22_spill] sm:$0xff] %v2902_v44  ;;  %v2905_v19 = vrot.slane %v1364_v40, %v2771_v52  ;;  %v1703_v39 = vcombine.low %v2883_v14, %v2902_v44  ;;  %v1363_v14 = vcombine.low %v2886_v4, %v2890_v11 }
  0xac   : > { %1432 = vrot.lane.b32.xlu1 %v2905_v19, %s2521_s29 }
  0xad   : > { %v2911_v54 = vpop.permute.xlu0 %1917 }
  0xae   : > { %v594_v51 = vpop.permute.xlu1 %593 }
  0xaf   : > { %v688_v3 = vcombine.high %v594_v51, %v4171_v0  ;;  %v2918_v13 = vrot.slane %v594_v51, %v2635_v16 }
  0xb1   : > { %v2924_v5 = vrot.slane %v688_v3, %v2635_v16  ;;  %v704_v53 = vcombine.high %v2914_v55, %v2918_v13  ;;  %v2930_v40 = vpop.permute.xlu0 %1025 }
  0xb2   : > { %v2928_v58 = vpop.permute.xlu1 %1033 }
  0xb3   : > { %v2935_v51 = vrot.slane %v704_v53, %v2771_v52 }
  0xb5   : > { %772 = vrot.lane.b32.xlu0 %v2935_v51, %s2521_s29  ;;  %v2941_v46 = vpop.permute.xlu0 %1251 }
  0xb6   : > { %v1692_v3 = vpop.permute.xlu1 %1691  ;;  %v2952_v53 = vrot.slane %v2941_v46, %v2635_v16 }
  0xb7   : > { %v1786_v25 = vcombine.high %v1692_v3, %v4171_v0  ;;  %v2948_v35 = vrot.slane %v1692_v3, %v2635_v16 }
  0xb8   : > { %v1297_v3 = vcombine.high %v2955_v61, %v2952_v53 }
  0xb9   : > { %v2961_v50 = vrot.slane %v1786_v25, %v2635_v16  ;;  %v1802_v15 = vcombine.high %v2944_v29, %v2948_v35  ;;  %v2969_v9 = vpop.permute.xlu0 %1907  ;;  %v1110_v25 = vcombine.low %v2881_v2, %v2879_v1  ;;  %v1993_v1 = vcombine.high %v2900_v42, %v2911_v54 }
  0xba   : > { %v2967_v12 = vpop.permute.xlu1 %1915  ;;  %v2977_v32 = vrot.slane %v1297_v3, %v2771_v52 }
  0xbb   : > { %v2974_v0 = vrot.slane %v1802_v15, %v2771_v52  ;;  %v605_v15 = vcombine.low %v2877_v63, %v2875_v62  ;;  %v1118_v56 = vrot.slane %v1110_v25, %v2635_v16  ;;  %v3006_v62 = vrot.slane %v1111_v47, %v2635_v16 }
  0xbc   : > { %1404 = vrot.lane.b32.xlu0 %v2977_v32, %s2521_s29 }
  0xbd   : > { %1870 = vrot.lane.b32.xlu1 %v2974_v0, %s2521_s29  ;;  %v2987_v23 = vpop.permute.xlu0 %367  ;;  %v613_v3 = vrot.slane %v605_v15, %v2635_v16  ;;  %4242 = vst [vmem:[#allocation24_spill] sm:$0xff] %v3006_v62 }
  0xbe   : > { %v2985_v57 = vpop.permute.xlu1 %375 }
  0xc1   : > { %v2996_v37 = vpop.permute.xlu0 %591 }
  0xc2   : > { %v1032_v60 = vpop.permute.xlu1 %1031  ;;  %4240 = vst [vmem:[#allocation23_spill] sm:$0xff] %v2996_v37  ;;  %v628_v63 = vrot.slane %v2996_v37, %v2635_v16  ;;  %v3018_v37 = vrot.slane %v1703_v39, %v2635_v16  ;;  %v3036_v39 = vrot.slane %v1993_v1, %v2635_v16 }
  0xc3   : > { %v1126_v21 = vcombine.high %v1032_v60, %v4241_v20  ;;  %v1133_v33 = vrot.slane %v1032_v60, %v2635_v16 }
  0xc4   : > { %v637_v44 = vcombine.high %v613_v3, %v628_v63  ;;  %v636_v48 = vcombine.low %v613_v3, %v628_v63  ;;  %4245 = vst [vmem:[#allocation27_spill] sm:$0xff] %v3036_v39 }
  0xc5   : > { %v3011_v2 = vrot.slane %v1126_v21, %v2635_v16  ;;  %v1142_v25 = vcombine.high %v1118_v56, %v1133_v33  ;;  %v3015_v49 = vpop.permute.xlu0 %1689  ;;  %v1379_v21 = vcombine.low %v2898_v41, %v2893_v17 }
  0xc6   : > { %v1914_v60 = vpop.permute.xlu1 %1913  ;;  %4244 = vst [vmem:[#allocation26_spill] sm:$0xff] %v3015_v49  ;;  %v3027_v10 = vrot.slane %v3015_v49, %v2635_v16  ;;  %v3033_v11 = vrot.slane %v637_v44, %v2771_v52  ;;  %v703_v44 = vcombine.low %v2914_v55, %v2918_v13  ;;  %v3065_v62 = vrot.slane %v636_v48, %v2771_v52 }
  0xc7   : > { %4243 = vst [vmem:[#allocation25_spill] sm:$0xff] %v3011_v2  ;;  %v2008_v15 = vcombine.high %v1914_v60, %v4241_v20  ;;  %v3030_v4 = vrot.slane %v1142_v25, %v2771_v52  ;;  %v3056_v25 = vrot.slane %v1363_v14, %v2771_v52  ;;  %v3059_v49 = vrot.slane %v1379_v21, %v2771_v52 }
  0xc8   : > { %v1735_v17 = vcombine.high %v3018_v37, %v3027_v10  ;;  %744 = vrot.lane.b32.xlu1 %v3033_v11, %s2521_s29  ;;  %4248 = vst [vmem:[#allocation30_spill] sm:$0xff] %v3065_v62  ;;  %v1044_v2 = vcombine.high %v2930_v40, %v2928_v58  ;;  %v1926_v55 = vcombine.high %v2969_v9, %v2967_v12 }
  0xc9   : > { %v3039_v47 = vrot.slane %v2008_v15, %v2635_v16  ;;  %1210 = vrot.lane.b32.xlu0 %v3030_v4, %s2521_s29  ;;  %v3049_v3 = vpop.permute.xlu0 %365  ;;  %4247 = vst [vmem:[#allocation29_spill] sm:$0xff] %v3056_v25  ;;  %v1141_v15 = vcombine.low %v1118_v56, %v1133_v33  ;;  %v1043_v14 = vcombine.low %v2930_v40, %v2928_v58 }
  0xca   : > { %v3047_v63 = vpop.permute.xlu1 %373  ;;  %v3062_v41 = vrot.slane %v1735_v17, %v2771_v52  ;;  %v1395_v13 = vcombine.high %v3056_v25, %v4241_v20  ;;  %v3082_v21 = vrot.slane %v703_v44, %v2771_v52  ;;  %v1296_v58 = vcombine.low %v2955_v61, %v2952_v53 }
  0xcb   : > { %4246 = vst [vmem:[#allocation28_spill] sm:$0xff] %v3039_v47  ;;  %v668_v1 = vcombine.high %v3065_v62, %v4241_v20  ;;  %v3092_v39 = vrot.slane %v1141_v15, %v2771_v52  ;;  %v3095_v47 = vrot.slane %v1044_v2, %v2635_v16  ;;  %v3098_v25 = vrot.slane %v1926_v55, %v2635_v16  ;;  %v4281_v62 = vld [vmem:[#allocation20_spill] sm:$0xff] }
  0xcc   : > { %1842 = vrot.lane.b32.xlu1 %v3062_v41, %s2521_s29  ;;  %v3107_v61 = vrot.slane %v1043_v14, %v2635_v16  ;;  %v1801_v2 = vcombine.low %v2944_v29, %v2948_v35  ;;  %v735_v14 = vcombine.high %v3082_v21, %v4241_v20  ;;  %v1992_v35 = vcombine.low %v2900_v42, %v2911_v54 }
  0xcd   : > { %1440 = vrot.lane.b32.xlu0 %v3059_v49, %s2523_s3  ;;  %v1030_v56 = vpop.permute.xlu0 %1029  ;;  %4249 = vst [vmem:[#allocation31_spill] sm:$0xff] %v3092_v39  ;;  %v1925_v29 = vcombine.low %v2969_v9, %v2967_v12 }
  0xce   : > { %v1912_v33 = vpop.permute.xlu1 %1911  ;;  %v1059_v17 = vcombine.high %v1030_v56, %v4241_v20  ;;  %v3087_v40 = vrot.slane %v1030_v56, %v2635_v16  ;;  %v3136_v15 = vrot.slane %v1801_v2, %v2771_v52  ;;  %v2000_v54 = vrot.slane %v1992_v35, %v2635_v16 }
  0xcf   : > { %v1941_v48 = vcombine.high %v1912_v33, %v4241_v20  ;;  %v3141_v42 = vrot.slane %v1912_v33, %v2635_v16  ;;  %v450_v2 = vcombine.low %v2987_v23, %v2985_v57 }
  0xd0   : > { %v3104_v53 = vrot.slane %v1059_v17, %v2635_v16  ;;  %740 = vrot.lane.b32.xlu1 %v668_v1, %s2520_s28  ;;  %v1074_v56 = vcombine.low %v3107_v61, %v3087_v40  ;;  %v3124_v1 = vrot.slane %v1296_v58, %v2771_v52  ;;  %v2015_v17 = vrot.slane %v1914_v60, %v2635_v16 }
  0xd1   : > { %v3101_v44 = vrot.slane %v1941_v48, %v2635_v16  ;;  %1428 = vrot.lane.b32.xlu0 %v1395_v13, %s2520_s28  ;;  %v1173_v48 = vcombine.high %v3092_v39, %v4241_v20  ;;  %v1396_v13 = vcombine.high %v2905_v19, %v4241_v20  ;;  %v1734_v58 = vcombine.low %v3018_v37, %v3027_v10  ;;  %v3149_v60 = vpop.permute.xlu0 %371 }
  0xd2   : > { %v1328_v9 = vcombine.high %v3124_v1, %v4241_v20  ;;  %v3146_v12 = vrot.slane %v1074_v56, %v2771_v52  ;;  %v3152_v19 = vrot.slane %v1925_v29, %v2635_v16  ;;  %v2023_v10 = vcombine.low %v2000_v54, %v2015_v17 }
  0xd3   : > { %v1833_v37 = vcombine.high %v3136_v15, %v4241_v20  ;;  %v3164_v56 = vrot.slane %v3149_v60, %v2635_v16  ;;  %v3172_v35 = vrot.slane %v450_v2, %v2635_v16  ;;  %v1329_v29 = vcombine.high %v2977_v32, %v4241_v20 }
  0xd4   : > { %1206 = vrot.lane.b32.xlu1 %v1173_v48, %s2520_s28  ;;  %v1956_v33 = vcombine.low %v3152_v19, %v3141_v42  ;;  %v3169_v48 = vrot.slane %v1734_v58, %v2771_v52  ;;  %v3183_v55 = vrot.slane %v2023_v10, %v2771_v52  ;;  %v898_v32 = vcombine.high %v2709_v36, %v4241_v20 }
  0xd5   : > { %768 = vrot.lane.b32.xlu0 %v735_v14, %s2520_s28  ;;  %v1106_v14 = vcombine.high %v3146_v12, %v4241_v20  ;;  %v4253_v36 = vcombine.high %v2604_v6, %v2610_v8 }
  0xd6   : > { %4250 = vst [vmem:[#allocation32_spill] sm:$0xff] %v3169_v48  ;;  %v3186_v58 = vrot.slane %v1956_v33, %v2771_v52  ;;  %v2055_v10 = vcombine.high %v3183_v55, %v4241_v20 }
  0xd8   : > { %1436 = vrot.lane.b32.xlu1 %v1396_v13, %s2522_s30  ;;  %v481_v13 = vcombine.low %v3172_v35, %v3164_v56  ;;  %4251 = vst [vmem:[#allocation33_spill] sm:$0xff] %v3186_v58  ;;  %v1988_v33 = vcombine.high %v3186_v58, %v4241_v20 }
  0xd9   : > { %1400 = vrot.lane.b32.xlu0 %v1328_v9, %s2520_s28  ;;  %v1766_v9 = vcombine.high %v3169_v48, %v4241_v20  ;;  %v4271_v48 = vld [vmem:[#allocation6_spill] sm:$0xff] }
  0xdc   : > { %1178 = vrot.lane.b32.xlu1 %v1106_v14, %s2520_s28  ;;  %v3201_v14 = vrot.slane %v481_v13, %v2771_v52 }
  0xdd   : > { %1866 = vrot.lane.b32.xlu0 %v1833_v37, %s2520_s28  ;;  %v736_v37 = vcombine.high %v2935_v51, %v4241_v20  ;;  %v1834_v51 = vcombine.high %v2974_v0, %v4241_v20  ;;  %v669_v0 = vcombine.high %v3033_v11, %v4241_v20  ;;  %v1397_v11 = vcombine.high %v3059_v49, %v4241_v20 }
  0xde   : > { %4252 = vst [vmem:[#allocation34_spill] sm:$0xff] %v3201_v14  ;;  %v513_v13 = vcombine.high %v3201_v14, %v4241_v20 }
  0xe0   : > { %1408 = vrot.lane.b32.xlu1 %v1329_v29, %s2522_s30  ;;  %v3212_v29 = vrot.slane %v898_v32, %v2635_v16  ;;  %v2024_v32 = vcombine.high %v2000_v54, %v2015_v17  ;;  %v1281_v17 = vcombine.high %v2941_v46, %v4241_v20  ;;  %v1174_v54 = vcombine.high %v3030_v4, %v4241_v20 }
  0xe1   : > { %1838 = vrot.lane.b32.xlu0 %v1766_v9, %s2520_s28  ;;  %v3209_v9 = vrot.slane %v4253_v36, %v2635_v16  ;;  %v1075_v46 = vcombine.high %v3107_v61, %v3087_v40  ;;  %v231_v4 = vcombine.high %v2670_v28, %v4241_v20  ;;  %v1817_v28 = vcombine.low %v2958_v38, %v2961_v50  ;;  %v4254_v40 = vld [vmem:[#allocation5_spill] sm:$0xff] }
  0xe2   : > { %v2038_v36 = vrot.slane %v2024_v32, %v2771_v52  ;;  %v4255_v61 = vcombine.high %v2607_v7, %v4254_v40  ;;  %v4258_v7 = vld [vmem:[#allocation15_spill] sm:$0xff] }
  0xe3   : > { %v929_v6 = vcombine.low %v3209_v9, %v3212_v29  ;;  %v4261_v40 = vld [vmem:[#allocation23_spill] sm:$0xff] }
  0xe4   : > { %2060 = vrot.lane.b32.xlu1 %v1988_v33, %s2520_s28  ;;  %v3274_v32 = vrot.slane %v4255_v61, %v2635_v16  ;;  %v621_v61 = vcombine.high %v4261_v40, %v4241_v20 }
  0xe5   : > { %2088 = vrot.lane.b32.xlu0 %v2055_v10, %s2520_s28  ;;  %v719_v10 = vcombine.low %v2921_v18, %v2924_v5 }
  0xe6   : > { %4256 = vst [vmem:[#allocation5_spill] sm:$0xff] %v3274_v32 }
  0xe7   : > { %v727_v33 = vrot.slane %v719_v10, %v2771_v52  ;;  %v879_v10 = vcombine.high %v2837_v45, %v4241_v20  ;;  %v1607_v45 = vcombine.high %v2833_v22, %v4241_v20  ;;  %v383_v22 = vcombine.low %v3049_v3, %v3047_v63 }
  0xe8   : > { %546 = vrot.lane.b32.xlu1 %v513_v13, %s2520_s28  ;;  %v1266_v13 = vcombine.high %v2860_v43, %v2862_v59  ;;  %v3264_v59 = vrot.slane %v1075_v46, %v2771_v52  ;;  %v4263_v46 = vld [vmem:[#allocation18_spill] sm:$0xff] }
  0xe9   : > { %776 = vrot.lane.b32.xlu0 %v736_v37, %s2522_s30  ;;  %v937_v37 = vrot.slane %v929_v6, %v2771_v52  ;;  %v3248_v6 = vrot.slane %v1281_v17, %v2635_v16 }
  0xea   : > { %v3257_v43 = vrot.slane %v1266_v13, %v2635_v16 }
  0xec   : > { %780 = vrot.lane.b32.xlu1 %v727_v33, %s2523_s3  ;;  %v1312_v49 = vcombine.low %v3257_v43, %v3248_v6 }
  0xed   : > { %1874 = vrot.lane.b32.xlu0 %v1834_v51, %s2522_s30  ;;  %v3277_v51 = vrot.slane %v231_v4, %v2635_v16  ;;  %v3305_v4 = vrot.slane %v383_v22, %v2635_v16  ;;  %v1957_v22 = vcombine.high %v3152_v19, %v3141_v42  ;;  %v3336_v42 = vrot.slane %v621_v61, %v2635_v16 }
  0xee   : > { %v3285_v17 = vrot.slane %v1312_v49, %v2771_v52  ;;  %v947_v61 = vcombine.high %v937_v37, %v4241_v20 }
  0xef   : > { %4257 = vst [vmem:[#allocation35_spill] sm:$0xff] %v3277_v51  ;;  %v1971_v19 = vrot.slane %v1957_v22, %v2771_v52  ;;  %v4286_v51 = vld [vmem:[#allocation19_spill] sm:$0xff] }
  0xf0   : > { %990 = vrot.lane.b32.xlu1 %v937_v37, %s2523_s3 }
  0xf1   : > { %2092 = vrot.lane.b32.xlu0 %v2038_v36, %s2521_s29 }
  0xf4   : > { %1214 = vrot.lane.b32.xlu1 %v1174_v54, %s2522_s30  ;;  %v4259_v54 = vld [vmem:[#allocation16_spill] sm:$0xff] }
  0xf5   : > { %748 = vrot.lane.b32.xlu0 %v669_v0, %s2522_s30  ;;  %v3288_v0 = vrot.slane %v1817_v28, %v2771_v52  ;;  %v4260_v13 = vcombine.low %v4258_v7, %v4259_v54  ;;  %v2056_v28 = vcombine.high %v2038_v36, %v4241_v20  ;;  %v4262_v36 = vld [vmem:[#allocation17_spill] sm:$0xff] }
  0xf6   : > { %v606_v8 = vcombine.high %v4263_v46, %v4262_v36  ;;  %v4269_v36 = vld [vmem:[#allocation24_spill] sm:$0xff] }
  0xf8   : > { %1444 = vrot.lane.b32.xlu1 %v1397_v11, %s2524_s4  ;;  %v3302_v11 = vpop.permute.xlu1 %369  ;;  %v3346_v40 = vrot.slane %v606_v8, %v2635_v16  ;;  %v4270_v8 = vld [vmem:[#allocation7_spill] sm:$0xff] }
  0xf9   : > { %958 = vrot.lane.b32.xlu0 %v879_v10, %s2522_s30  ;;  %v3298_v10 = vrot.slane %v4260_v13, %v2771_v52  ;;  %v3311_v49 = vrot.slane %v3302_v11, %v2635_v16 }
  0xfa   : > { %v652_v22 = vcombine.low %v3346_v40, %v3336_v42 }
  0xfc   : > { %1654 = vrot.lane.b32.xlu1 %v1607_v45, %s2524_s4  ;;  %v482_v45 = vcombine.high %v3172_v35, %v3164_v56  ;;  %v414_v56 = vcombine.low %v3305_v4, %v3311_v49  ;;  %v1767_v35 = vcombine.high %v3062_v41, %v4241_v20  ;;  %v3330_v2 = vpop.permute.xlu1 %1638  ;;  %v737_v41 = vcombine.high %v727_v33, %v4241_v20 }
  0xfd   : > { %1182 = vrot.lane.b32.xlu0 %v3264_v59, %s2521_s29  ;;  %4264 = vst [vmem:[#allocation15_spill] sm:$0xff] %v3330_v2  ;;  %v4272_v2 = vcombine.high %v4270_v8, %v4271_v48  ;;  %v660_v37 = vrot.slane %v652_v22, %v2771_v52  ;;  %v3378_v48 = vpop.permute.xlu0 %1610  ;;  %v4280_v8 = vld [vmem:[#allocation21_spill] sm:$0xff] }
  0xfe   : > { %v3326_v13 = vrot.slane %v482_v45, %v2771_v52  ;;  %v3341_v45 = vrot.slane %v414_v56, %v2771_v52  ;;  %v4268_v56 = vld [vmem:[#allocation25_spill] sm:$0xff] }
  0xff   : > { %v3363_v39 = vrot.slane %v4272_v2, %v2635_v16  ;;  %4276 = vst [vmem:[#allocation25_spill] sm:$0xff] %v3378_v48  ;;  %v4277_v2 = vcombine.low %v2868_v26, %v2871_v27  ;;  %v4282_v48 = vcombine.high %v4280_v8, %v4281_v62  ;;  %v1107_v62 = vcombine.high %v3264_v59, %v4241_v20  ;;  %v4285_v8 = vld [vmem:[#allocation22_spill] sm:$0xff] }
 0x100   : > { %1878 = vrot.lane.b32.xlu1 %v3288_v0, %s2523_s3  ;;  %4265 = vst [vmem:[#allocation16_spill] sm:$0xff] %v3341_v45  ;;  %v446_v33 = vcombine.high %v3341_v45, %v4241_v20  ;;  %v1704_v32 = vcombine.high %v4286_v51, %v4285_v8  ;;  %v1835_v59 = vcombine.high %v3288_v0, %v4241_v20 }
 0x101   : > { %1412 = vrot.lane.b32.xlu0 %v3285_v17, %s2523_s3  ;;  %4273 = vst [vmem:[#allocation17_spill] sm:$0xff] %v3363_v39 }
 0x104   : > { %2096 = vrot.lane.b32.xlu1 %v2056_v28, %s2522_s30  ;;  %v4266_v28 = vld [vmem:[#allocation8_spill] sm:$0xff] }
 0x105   : > { %1622 = vrot.lane.b32.xlu0 %v3298_v10, %s2523_s3  ;;  %v164_v46 = vcombine.high %v4266_v28, %v4241_v20  ;;  %v1157_v28 = vcombine.low %v4269_v36, %v4268_v56 }
 0x107   : > { %v3372_v45 = vrot.slane %v1157_v28, %v2771_v52  ;;  %v3407_v28 = vpop.permute.xlu0 %982 }
 0x108   : > { %550 = vrot.lane.b32.xlu1 %v3326_v13, %s2521_s29 }
 0x109   : > { %1846 = vrot.lane.b32.xlu0 %v1767_v35, %s2522_s30  ;;  %v3351_v35 = vpop.permute.xlu1 %978 }
 0x10a   : > { %4267 = vst [vmem:[#allocation23_spill] sm:$0xff] %v3351_v35 }
 0x10c   : > { %784 = vrot.lane.b32.xlu1 %v737_v41, %s2524_s4  ;;  %v3366_v41 = vrot.slane %v164_v46, %v2635_v16  ;;  %v870_v46 = vrot.slane %v4277_v2, %v2771_v52 }
 0x10d   : > { %2064 = vrot.lane.b32.xlu0 %v1971_v19, %s2521_s29  ;;  %v3376_v58 = vpop.permute.xlu1 %1642 }
 0x10e   : > { %4274 = vst [vmem:[#allocation18_spill] sm:$0xff] %v3366_v41  ;;  %4275 = vst [vmem:[#allocation8_spill] sm:$0xff] %v3376_v58  ;;  %v3395_v58 = vrot.slane %v4282_v48, %v2771_v52  ;;  %v1330_v48 = vcombine.high %v3285_v17, %v4241_v20  ;;  %v3428_v41 = vrot.slane %v1704_v32, %v2635_v16 }
 0x10f   : > { %v415_v17 = vcombine.high %v3305_v4, %v3311_v49  ;;  %v1989_v49 = vcombine.high %v1971_v19, %v4241_v20  ;;  %v1313_v19 = vcombine.high %v3257_v43, %v3248_v6  ;;  %v4295_v43 = vcombine.high %v2921_v18, %v2924_v5 }
 0x110   : > { %994 = vrot.lane.b32.xlu1 %v947_v61, %s2524_s4  ;;  %v4278_v61 = vld [vmem:[#allocation14_spill] sm:$0xff] }
 0x111   : > { %518 = vrot.lane.b32.xlu0 %v446_v33, %s2520_s28  ;;  %v4279_v33 = vld [vmem:[#allocation13_spill] sm:$0xff]  ;;  %v3405_v35 = vpop.permute.xlu1 %950 }
 0x112   : > { %v1590_v22 = vcombine.high %v4279_v33, %v4278_v61  ;;  %v4283_v61 = vld [vmem:[#allocation26_spill] sm:$0xff]  ;;  %4284 = vst [vmem:[#allocation24_spill] sm:$0xff] %v3405_v35 }
 0x113   : > { %v1719_v33 = vcombine.high %v4283_v61, %v4241_v20  ;;  %v4288_v61 = vld [vmem:[#allocation27_spill] sm:$0xff] }
 0x114   : > { %1218 = vrot.lane.b32.xlu1 %v3372_v45, %s2523_s3  ;;  %v3401_v2 = vrot.slane %v1590_v22, %v2771_v52  ;;  %v4287_v22 = vld [vmem:[#allocation28_spill] sm:$0xff] }
 0x115   : > { %752 = vrot.lane.b32.xlu0 %v660_v37, %s2523_s3  ;;  %v2039_v14 = vcombine.low %v4288_v61, %v4287_v22  ;;  %v3421_v35 = vrot.slane %v1719_v33, %v2635_v16  ;;  %v3430_v51 = vpop.permute.xlu1 %1646  ;;  %v1540_v33 = vcombine.high %v3298_v10, %v4241_v20 }
 0x116   : > { %4289 = vst [vmem:[#allocation7_spill] sm:$0xff] %v3430_v51 }
 0x117   : > { %v1750_v0 = vcombine.low %v3428_v41, %v3421_v35  ;;  %v3443_v32 = vrot.slane %v2039_v14, %v2771_v52  ;;  %v4291_v14 = vcombine.low %v2659_v24, %v2676_v30 }
 0x118   : > { %1448 = vrot.lane.b32.xlu1 %v3395_v58, %s2525_s5 }
 0x119   : > { %962 = vrot.lane.b32.xlu0 %v870_v46, %s2523_s3  ;;  %v1758_v10 = vrot.slane %v1750_v0, %v2771_v52  ;;  %v3460_v4 = vrot.slane %v4291_v14, %v2771_v52  ;;  %v1090_v14 = vcombine.low %v3095_v47, %v3104_v53 }
 0x11b   : > { %4292 = vst [vmem:[#allocation14_spill] sm:$0xff] %v3460_v4 }
 0x11c   : > { %1658 = vrot.lane.b32.xlu1 %v3401_v2, %s2525_s5 }
 0x11d   : > { %1186 = vrot.lane.b32.xlu0 %v1107_v62, %s2522_s30  ;;  %v3432_v62 = vpop.permute.xlu0 %1614 }
 0x11e   : > { %4290 = vst [vmem:[#allocation6_spill] sm:$0xff] %v3432_v62  ;;  %v880_v62 = vcombine.high %v870_v46, %v4241_v20 }
 0x120   : > { %1882 = vrot.lane.b32.xlu1 %v1835_v59, %s2524_s4  ;;  %v429_v59 = vrot.slane %v415_v17, %v2771_v52  ;;  %v278_v17 = vcombine.high %v3460_v4, %v4241_v20 }
 0x121   : > { %1416 = vrot.lane.b32.xlu0 %v1330_v48, %s2524_s4  ;;  %v3448_v48 = vpop.permute.xlu1 %954  ;;  %v3450_v8 = vpop.permute.xlu0 %986 }
 0x124   : > { %2100 = vrot.lane.b32.xlu1 %v3443_v32, %s2523_s3 }
 0x125   : > { %1626 = vrot.lane.b32.xlu0 %v1540_v33, %s2524_s4  ;;  %v670_v33 = vcombine.high %v660_v37, %v4241_v20  ;;  %v3465_v39 = vpop.permute.xlu1 %1618  ;;  %v3467_v0 = vpop.permute.xlu0 %1650  ;;  %v514_v37 = vcombine.high %v3326_v13, %v4241_v20  ;;  %v3501_v13 = vrot.slane %v4295_v43, %v2771_v52 }
 0x126   : > { %4293 = vst [vmem:[#allocation13_spill] sm:$0xff] %v3465_v39  ;;  %4294 = vst [vmem:[#allocation21_spill] sm:$0xff] %v3467_v0  ;;  %v1398_v39 = vcombine.high %v3395_v58, %v4241_v20 }
 0x128   : > { %522 = vrot.lane.b32.xlu1 %v429_v59, %s2521_s29 }
 0x129   : > { %1850 = vrot.lane.b32.xlu0 %v1758_v10, %s2523_s3  ;;  %v3481_v46 = vpop.permute.xlu1 %1432 }
 0x12c   : > { %756 = vrot.lane.b32.xlu1 %v670_v33, %s2524_s4  ;;  %v3486_v33 = vrot.slane %v1090_v14, %v2771_v52  ;;  %v3504_v14 = vrot.slane %v1313_v19, %v2771_v52  ;;  %v1972_v19 = vcombine.low %v3098_v25, %v3101_v44 }
 0x12d   : > { %2068 = vrot.lane.b32.xlu0 %v1989_v49, %s2522_s30  ;;  %v3483_v49 = vpop.permute.xlu0 %772 }
 0x12e   : > { %v3551_v0 = vrot.slane %v1972_v19, %v2771_v52  ;;  %v653_v19 = vcombine.high %v3346_v40, %v3336_v42 }
 0x130   : > { %966 = vrot.lane.b32.xlu1 %v880_v62, %s2524_s4  ;;  %v930_v62 = vcombine.high %v3209_v9, %v3212_v29  ;;  %v4296_v29 = vcombine.high %v4258_v7, %v4259_v54  ;;  %v1768_v54 = vcombine.high %v1758_v10, %v4241_v20  ;;  %v1608_v10 = vcombine.high %v3401_v2, %v4241_v20 }
 0x131   : > { %311 = vrot.lane.b32.xlu0 %v278_v17, %s2520_s28  ;;  %v3493_v17 = vpop.permute.xlu1 %1870  ;;  %v3495_v6 = vpop.permute.xlu0 %1404  ;;  %v466_v2 = vcombine.high %v3149_v60, %v4241_v20 }
 0x132   : > { %v3511_v9 = vrot.slane %v930_v62, %v2771_v52  ;;  %v1175_v62 = vcombine.high %v3372_v45, %v4241_v20 }
 0x133   : > { %v3585_v60 = vrot.slane %v466_v2, %v2635_v16 }
 0x134   : > { %1190 = vrot.lane.b32.xlu1 %v3486_v33, %s2523_s3 }
 0x135   : > { %554 = vrot.lane.b32.xlu0 %v514_v37, %s2522_s30  ;;  %v3517_v37 = vrot.slane %v4296_v29, %v2771_v52  ;;  %v4298_v29 = vcombine.low %v2679_v31, %v2692_v34 }
 0x137   : > { %v3542_v4 = vrot.slane %v4298_v29, %v2771_v52 }
 0x138   : > { %1420 = vrot.lane.b32.xlu1 %v3504_v14, %s2525_s5 }
 0x139   : > { %788 = vrot.lane.b32.xlu0 %v3501_v13, %s2525_s5  ;;  %4299 = vst [vmem:[#allocation26_spill] sm:$0xff] %v3542_v4 }
 0x13a   : > { %v3519_v18 = vpop.permute.xlu1 %744 }
 0x13b   : > { %v3521_v5 = vpop.permute.xlu0 %1210 }
 0x13c   : > { %1630 = vrot.lane.b32.xlu1 %v3517_v37, %s2525_s5 }
 0x13d   : > { %998 = vrot.lane.b32.xlu0 %v3511_v9, %s2525_s5 }
 0x13e   : > { %v3531_v43 = vpop.permute.xlu1 %1842 }
 0x13f   : > { %4297 = vst [vmem:[#allocation20_spill] sm:$0xff] %v3531_v43  ;;  %v3533_v7 = vpop.permute.xlu0 %1440 }
 0x140   : > { %1854 = vrot.lane.b32.xlu1 %v1768_v54, %s2524_s4 }
 0x141   : > { %1222 = vrot.lane.b32.xlu0 %v1175_v62, %s2524_s4  ;;  %v211_v62 = vcombine.high %v3542_v4, %v4241_v20  ;;  %v4300_v4 = vcombine.high %v2958_v38, %v2961_v50  ;;  %v2057_v50 = vcombine.high %v3443_v32, %v4241_v20  ;;  %v3594_v38 = vrot.slane %v653_v19, %v2771_v52 }
 0x142   : > { %v3546_v45 = vpop.permute.xlu1 %740  ;;  %v4302_v32 = vcombine.high %v2868_v26, %v2871_v27  ;;  %v1108_v27 = vcombine.high %v3486_v33, %v4241_v20  ;;  %v1331_v33 = vcombine.high %v3504_v14, %v4241_v20 }
 0x143   : > { %v3548_v43 = vpop.permute.xlu0 %1428  ;;  %v3576_v51 = vrot.slane %v4300_v4, %v2771_v52 }
 0x144   : > { %2072 = vrot.lane.b32.xlu1 %v3551_v0, %s2523_s3  ;;  %v3612_v4 = vrot.slane %v4302_v32, %v2771_v52 }
 0x145   : > { %1452 = vrot.lane.b32.xlu0 %v1398_v39, %s2526_s6 }
 0x146   : > { %v3560_v58 = vpop.permute.xlu1 %1206 }
 0x147   : > { %v769_v54 = vpop.permute.xlu0 %768 }
 0x148   : > { %283 = vrot.lane.b32.xlu1 %v211_v62, %s2520_s28  ;;  %v451_v62 = vcombine.high %v2987_v23, %v2985_v57  ;;  %v4301_v23 = vcombine.high %v2659_v24, %v2676_v30 }
 0x149   : > { %1662 = vrot.lane.b32.xlu0 %v1608_v10, %s2526_s6  ;;  %v447_v10 = vcombine.high %v429_v59, %v4241_v20 }
 0x14a   : > { %v3568_v39 = vpop.permute.xlu1 %1436  ;;  %v3597_v57 = vrot.slane %v451_v62, %v2635_v16  ;;  %v3606_v59 = vrot.slane %v4301_v23, %v2771_v52  ;;  %v1751_v62 = vcombine.high %v3428_v41, %v3421_v35  ;;  %v948_v35 = vcombine.high %v3511_v9, %v4241_v20 }
 0x14b   : > { %v3570_v29 = vpop.permute.xlu0 %1400 }
 0x14c   : > { %526 = vrot.lane.b32.xlu1 %v447_v10, %s2522_s30  ;;  %v497_v19 = vcombine.low %v3597_v57, %v3585_v60 }
 0x14d   : > { %1886 = vrot.lane.b32.xlu0 %v3576_v51, %s2525_s5 }
 0x14e   : > { %v3587_v42 = vpop.permute.xlu1 %1178  ;;  %v3627_v26 = vrot.slane %v497_v19, %v2771_v52  ;;  %v738_v19 = vcombine.high %v3501_v13, %v4241_v20  ;;  %v399_v13 = vcombine.high %v3302_v11, %v4241_v20 }
 0x14f   : > { %v3589_v40 = vpop.permute.xlu0 %1866 }
 0x150   : > { %760 = vrot.lane.b32.xlu1 %v3594_v38, %s2525_s5 }
 0x151   : > { %2104 = vrot.lane.b32.xlu0 %v2057_v50, %s2524_s4  ;;  %v802_v50 = vsel %vm338_vm0, %v3082_v21, %v769_v54  ;;  %v384_v21 = vcombine.high %v3049_v3, %v3047_v63  ;;  %v3665_v3 = vrot.slane %v399_v13, %v2635_v16 }
 0x152   : > { %v3616_v2 = vpop.permute.xlu1 %1408  ;;  %v803_v41 = vsel %vm340_vm1, %v802_v50, %v3483_v49 }
 0x153   : > { %v3618_v10 = vpop.permute.xlu0 %1838  ;;  %v3662_v63 = vrot.slane %v384_v21, %v2635_v16  ;;  %v1541_v16 = vcombine.high %v3517_v37, %v4241_v20 }
 0x154   : > { %970 = vrot.lane.b32.xlu1 %v3612_v4, %s2525_s5 }
 0x155   : > { %315 = vrot.lane.b32.xlu0 %v3606_v59, %s2521_s29 }
 0x156   : > { %v3624_v24 = vpop.permute.xlu1 %2060 }
 0x157   : > { %v2089_v30 = vpop.permute.xlu0 %2088 }
 0x158   : > { %1194 = vrot.lane.b32.xlu1 %v1108_v27, %s2524_s4  ;;  %v2122_v11 = vsel %vm338_vm0, %v3183_v55, %v2089_v30  ;;  %v4304_v55 = vcombine.high %v2679_v31, %v2692_v34  ;;  %v1836_v31 = vcombine.high %v3576_v51, %v4241_v20  ;;  %v1233_v51 = vsel %vm338_vm0, %v3146_v12, %v3587_v42 }
 0x159   : > { %558 = vrot.lane.b32.xlu0 %v3627_v26, %s2523_s3 }
 0x15a   : > { %v3638_v23 = vpop.permute.xlu1 %546 }
 0x15b   : > { %v777_v32 = vpop.permute.xlu0 %776 }
 0x15c   : > { %1424 = vrot.lane.b32.xlu1 %v1331_v33, %s2526_s6  ;;  %v804_v14 = vsel %vm342_vm2, %v803_v41, %v777_v32  ;;  %v1990_v32 = vcombine.high %v3551_v0, %v4241_v20  ;;  %v4305_v41 = vcombine.high %v4288_v61, %v4287_v22 }
 0x15d   : > { %792 = vrot.lane.b32.xlu0 %v738_v19, %s2526_s6  ;;  %v1765_v19 = vrot.slane %v1751_v62, %v2771_v52  ;;  %v4303_v62 = vcombine.high %v4269_v36, %v4268_v56  ;;  %v3689_v56 = vrot.slane %v4304_v55, %v2771_v52  ;;  %v430_v36 = vcombine.low %v3662_v63, %v3665_v3  ;;  %v4307_v55 = vld [vmem:[#allocation34_spill] sm:$0xff] }
 0x15e   : > { %v781_v54 = vpop.permute.xlu1 %780  ;;  %v2054_v13 = vrot.slane %v4305_v41, %v2771_v52 }
 0x15f   : > { %v1875_v27 = vpop.permute.xlu0 %1874  ;;  %v3657_v33 = vsel %vm344_vm3, %v804_v14, %v781_v54  ;;  %v3675_v50 = vrot.slane %v4303_v62, %v2771_v52  ;;  %v3707_v34 = vrot.slane %v430_v36, %v2771_v52  ;;  %v1455_v14 = vsel %vm338_vm0, %v3124_v1, %v3570_v29 }
 0x160   : > { %1858 = vrot.lane.b32.xlu1 %v1765_v19, %s2525_s5  ;;  %v1900_v54 = vsel %vm338_vm0, %v3136_v15, %v3589_v40  ;;  %v671_v62 = vcombine.high %v3594_v38, %v4241_v20  ;;  %v279_v1 = vcombine.high %v3606_v59, %v4241_v20  ;;  %v1456_v12 = vsel %vm340_vm1, %v1455_v14, %v3495_v6  ;;  %v4309_v14 = vld [vmem:[#allocation11_spill] sm:$0xff] }
 0x161   : > { %1002 = vrot.lane.b32.xlu0 %v948_v35, %s2526_s6  ;;  %v1901_v15 = vsel %vm340_vm1, %v1900_v54, %v3493_v17  ;;  %v1457_v61 = vsel %vm342_vm2, %v1456_v12, %v3616_v2  ;;  %v4306_v38 = vcombine.high %v3095_v47, %v3104_v53  ;;  %v1769_v47 = vcombine.high %v1765_v19, %v4241_v20  ;;  %v4308_v19 = vld [vmem:[#allocation23_spill] sm:$0xff] }
 0x162   : > { %v3669_v49 = vpop.permute.xlu1 %990  ;;  %v1902_v29 = vsel %vm342_vm2, %v1901_v15, %v1875_v27  ;;  %v515_v27 = vcombine.high %v3627_v26, %v4241_v20  ;;  %v580_v36 = vsel %vm338_vm0, %v4307_v55, %v3638_v23  ;;  %v2058_v26 = vcombine.high %v2054_v13, %v4241_v20  ;;  %v4311_v54 = vld [vmem:[#allocation35_spill] sm:$0xff] }
 0x163   : > { %v2093_v9 = vpop.permute.xlu0 %2092  ;;  %v4318_v55 = vld [vmem:[#allocation15_spill] sm:$0xff] }
 0x164   : > { %v2123_v35 = vsel %vm340_vm1, %v2122_v11, %v2093_v9  ;;  %2076 = vrot.lane.b32.xlu1 %v1990_v32, %s2524_s4  ;;  %v3747_v32 = vrot.slane %v4306_v38, %v2771_v52  ;;  %v4316_v38 = vld [vmem:[#allocation29_spill] sm:$0xff] }
 0x165   : > { %1226 = vrot.lane.b32.xlu0 %v3675_v50, %s2525_s5 }
 0x166   : > { %v3693_v0 = vpop.permute.xlu1 %1214 }
 0x167   : > { %v3695_v30 = vpop.permute.xlu0 %748 }
 0x168   : > { %287 = vrot.lane.b32.xlu1 %v3689_v56, %s2521_s29  ;;  %s4127_s29 = scalar_lea.sflag [#allocation3], %s134_s17 }
 0x169   : > { %1634 = vrot.lane.b32.xlu0 %v1541_v16, %s2526_s6  ;;  %v881_v16 = vcombine.high %v3612_v4, %v4241_v20  ;;  %v4310_v4 = vld [vmem:[#allocation5_spill] sm:$0xff] }
 0x16a   : > { %v3700_v21 = vpop.permute.xlu1 %1444  ;;  %v4312_v23 = vcombine.low %v4310_v4, %v4311_v54 }
 0x16b   : > { %v3702_v37 = vpop.permute.xlu0 %958 }
 0x16c   : > { %530 = vrot.lane.b32.xlu1 %v3707_v34, %s2523_s3 }
 0x16d   : > { %1890 = vrot.lane.b32.xlu0 %v1836_v31, %s2526_s6 }
 0x16e   : > { %v3725_v11 = vpop.permute.xlu1 %1654 }
 0x16f   : > { %v1183_v9 = vpop.permute.xlu0 %1182 }
 0x170   : > { %v3730_v22 = vsel %vm340_vm1, %v1233_v51, %v1183_v9  ;;  %764 = vrot.lane.b32.xlu1 %v671_v62, %s2526_s6  ;;  %v270_v9 = vrot.slane %v4312_v23, %v2771_v52  ;;  %v498_v62 = vcombine.high %v3597_v57, %v3585_v60  ;;  %v4314_v60 = vcombine.high %v3098_v25, %v3101_v44 }
 0x171   : > { %2108 = vrot.lane.b32.xlu0 %v2054_v13, %s2525_s5 }
 0x172   : > { %v1879_v42 = vpop.permute.xlu1 %1878  ;;  %v1987_v57 = vrot.slane %v4314_v60, %v2771_v52 }
 0x173   : > { %v1413_v40 = vpop.permute.xlu0 %1412  ;;  %v3750_v59 = vsel %vm344_vm3, %v1902_v29, %v1879_v42  ;;  %v1176_v29 = vcombine.high %v3675_v50, %v4241_v20 }
 0x174   : > { %v3753_v6 = vsel %vm344_vm3, %v1457_v61, %v1413_v40  ;;  %1198 = vrot.lane.b32.xlu1 %v3747_v32, %s2525_s5 }
 0x175   : > { %319 = vrot.lane.b32.xlu0 %v279_v1, %s2522_s30  ;;  %v4313_v1 = vld [vmem:[#allocation33_spill] sm:$0xff] }
 0x176   : > { %v2097_v17 = vpop.permute.xlu1 %2096  ;;  %v2115_v12 = vsel %vm338_vm0, %v4313_v1, %v3624_v24  ;;  %v512_v24 = vrot.slane %v498_v62, %v2771_v52  ;;  %v1991_v1 = vcombine.high %v1987_v57, %v4241_v20 }
 0x177   : > { %v3758_v2 = vpop.permute.xlu0 %1622  ;;  %v3764_v53 = vsel %vm342_vm2, %v2123_v35, %v2097_v17  ;;  %v1012_v35 = vsel %vm338_vm0, %v4309_v14, %v4308_v19  ;;  %v1462_v17 = vsel %vm338_vm0, %v4316_v38, %v3548_v43  ;;  %v212_v43 = vcombine.high %v3689_v56, %v4241_v20 }
 0x178   : > { %1862 = vrot.lane.b32.xlu1 %v1769_v47, %s2526_s6  ;;  %v1013_v13 = vsel %vm340_vm1, %v1012_v35, %v3407_v28 }
 0x179   : > { %562 = vrot.lane.b32.xlu0 %v515_v27, %s2524_s4  ;;  %v1014_v28 = vsel %vm342_vm2, %v1013_v13, %v3450_v8  ;;  %v4317_v27 = vld [vmem:[#allocation31_spill] sm:$0xff] }
 0x17a   : > { %v551_v31 = vpop.permute.xlu1 %550  ;;  %v1240_v47 = vsel %vm338_vm0, %v4317_v27, %v3560_v58  ;;  %v1015_v8 = vsel %vm344_vm3, %v1014_v28, %v3669_v49  ;;  %v4320_v58 = vld [vmem:[#allocation24_spill] sm:$0xff]  ;;  %v4325_v27 = vld [vmem:[#allocation25_spill] sm:$0xff] }
 0x17b   : > { %v3773_v41 = vpop.permute.xlu0 %1846  ;;  %v3780_v51 = vsel %vm340_vm1, %v580_v36, %v551_v31  ;;  %v4319_v36 = vld [vmem:[#allocation9_spill] sm:$0xff]  ;;  %v4321_v31 = vld [vmem:[#allocation12_spill] sm:$0xff]  ;;  %v1241_v19 = vsel %vm340_vm1, %v1240_v47, %v3521_v5  ;;  %v4326_v47 = vld [vmem:[#allocation10_spill] sm:$0xff] }
 0x17c   : > { %2112 = vrot.lane.b32.xlu1 %v2058_v26, %s2526_s6  ;;  %v1005_v49 = vsel %vm338_vm0, %v4321_v31, %v4320_v58  ;;  %v1463_v26 = vsel %vm340_vm1, %v1462_v17, %v3481_v46  ;;  %v1242_v23 = vsel %vm342_vm2, %v1241_v19, %v3693_v0  ;;  %v4322_v46 = vld [vmem:[#allocation8_spill] sm:$0xff]  ;;  %v516_v17 = vcombine.high %v512_v24, %v4241_v20  ;;  %v4331_v31 = vld [vmem:[#allocation6_spill] sm:$0xff] }
 0x17d   : > { %974 = vrot.lane.b32.xlu0 %v881_v16, %s2526_s6  ;;  %v1464_v35 = vsel %vm342_vm2, %v1463_v26, %v3568_v39  ;;  %v280_v39 = vcombine.high %v270_v9, %v4241_v20  ;;  %v1006_v0 = vsel %vm340_vm1, %v1005_v49, %v3448_v48  ;;  %v431_v58 = vcombine.high %v3662_v63, %v3665_v3 }
 0x17e   : > { %v785_v15 = vpop.permute.xlu1 %784  ;;  %v1007_v28 = vsel %vm342_vm2, %v1006_v0, %v3702_v37 }
 0x17f   : > { %v2065_v61 = vpop.permute.xlu0 %2064  ;;  %v3799_v42 = vsel %vm346_vm4, %v3657_v33, %v785_v15  ;;  %v4315_v33 = vld [vmem:[#allocation30_spill] sm:$0xff]  ;;  %v4323_v15 = vld [vmem:[#allocation7_spill] sm:$0xff] }
 0x180   : > { %v3802_v40 = vsel %vm340_vm1, %v2115_v12, %v2065_v61  ;;  %323 = vrot.lane.b32.xlu1 %v270_v9, %s2523_s3  ;;  %v795_v50 = vsel %vm338_vm0, %v4315_v33, %v3546_v45  ;;  %v1672_v45 = vsel %vm338_vm0, %v4319_v36, %v4318_v55  ;;  %v448_v9 = vcombine.high %v3707_v34, %v4241_v20  ;;  %v4328_v36 = vld [vmem:[#allocation18_spill] sm:$0xff] }
 0x181   : > { %1230 = vrot.lane.b32.xlu0 %v1176_v29, %s2526_s6  ;;  %v796_v14 = vsel %vm340_vm1, %v795_v50, %v3519_v18  ;;  %v1673_v12 = vsel %vm340_vm1, %v1672_v45, %v4322_v46  ;;  %v1109_v34 = vcombine.high %v3747_v32, %v4241_v20 }
 0x182   : > { %v995_v16 = vpop.permute.xlu1 %994  ;;  %v797_v56 = vsel %vm342_vm2, %v796_v14, %v3695_v30  ;;  %v1465_v30 = vsel %vm344_vm3, %v1464_v35, %v3533_v7  ;;  %v1674_v61 = vsel %vm342_vm2, %v1673_v12, %v4323_v15  ;;  %v4324_v7 = vld [vmem:[#allocation21_spill] sm:$0xff]  ;;  %v4334_v35 = vld [vmem:[#allocation32_spill] sm:$0xff] }
 0x183   : > { %v3824_v25 = vpop.permute.xlu0 %518  ;;  %v3827_v44 = vsel %vm346_vm4, %v1015_v8, %v995_v16  ;;  %v1466_v29 = vsel %vm346_vm4, %v1465_v30, %v3700_v21  ;;  %v1675_v21 = vsel %vm344_vm3, %v1674_v61, %v4324_v7  ;;  %v1665_v8 = vsel %vm338_vm0, %v4326_v47, %v4325_v27  ;;  %v4335_v12 = vld [vmem:[#allocation20_spill] sm:$0xff] }
 0x184   : > { %566 = vrot.lane.b32.xlu1 %v512_v24, %s2525_s5  ;;  %v1676_v37 = vsel %vm346_vm4, %v1675_v21, %v3725_v11  ;;  %v4327_v11 = vld [vmem:[#allocation17_spill] sm:$0xff]  ;;  %v4330_v24 = vcombine.high %v4310_v4, %v4311_v54 }
 0x185   : > { %2080 = vrot.lane.b32.xlu0 %v1987_v57, %s2525_s5  ;;  %v4329_v32 = vcombine.low %v4327_v11, %v4328_v36  ;;  %v4332_v63 = vcombine.high %v4327_v11, %v4328_v36  ;;  %v4333_v4 = vld [vmem:[#allocation13_spill] sm:$0xff] }
 0x186   : > { %v1219_v62 = vpop.permute.xlu1 %1218 }
 0x187   : > { %v753_v13 = vpop.permute.xlu0 %752  ;;  %v3855_v5 = vsel %vm344_vm3, %v1242_v23, %v1219_v62  ;;  %v203_v45 = vrot.slane %v4329_v32, %v2771_v52  ;;  %v210_v3 = vrot.slane %v4332_v63, %v2771_v52  ;;  %v445_v62 = vrot.slane %v431_v58, %v2771_v52 }
 0x188   : > { %v3858_v18 = vsel %vm344_vm3, %v797_v56, %v753_v13  ;;  %2084 = vrot.lane.b32.xlu1 %v1991_v1, %s2526_s6 }
 0x189   : > { %291 = vrot.lane.b32.xlu0 %v212_v43, %s2522_s30  ;;  %v277_v43 = vrot.slane %v4330_v24, %v2771_v52  ;;  %v213_v46 = vcombine.high %v203_v45, %v4241_v20  ;;  %s2527_s30 = smov [#allocation2]  }
 0x18a   : > { %v1449_v60 = vpop.permute.xlu1 %1448 }
 0x18b   : > { %v963_v57 = vpop.permute.xlu0 %962  ;;  %v3876_v33 = vsel %vm348_vm5, %v1466_v29, %v1449_v60  ;;  %v449_v60 = vcombine.high %v445_v62, %v4241_v20 }
 0x18c   : > { %v1008_v48 = vsel %vm344_vm3, %v1007_v28, %v963_v57  ;;  %327 = vrot.lane.b32.xlu1 %v280_v39, %s2524_s4  ;;  %v4336_v39 = vld [vmem:[#allocation16_spill] sm:$0xff]  ;;  %v281_v57 = vcombine.high %v277_v43, %v4241_v20 }
 0x18d   : > { %534 = vrot.lane.b32.xlu0 %v448_v9, %s2524_s4 }
 0x18e   : > { %v1659_v50 = vpop.permute.xlu1 %1658 }
 0x18f   : > { %v1187_v38 = vpop.permute.xlu0 %1186  ;;  %v3892_v16 = vsel %vm348_vm5, %v1676_v37, %v1659_v50 }
 0x190   : > { %v1235_v55 = vsel %vm342_vm2, %v3730_v22, %v1187_v38  ;;  %570 = vrot.lane.b32.xlu1 %v516_v17, %s2526_s6  ;;  %v1666_v22 = vsel %vm340_vm1, %v1665_v8, %v4331_v31 }
 0x191   : > { %1202 = vrot.lane.b32.xlu0 %v1109_v34, %s2526_s6  ;;  %v1667_v54 = vsel %vm342_vm2, %v1666_v22, %v4333_v4 }
 0x192   : > { %v1883_v49 = vpop.permute.xlu1 %1882  ;;  %v1668_v23 = vsel %vm344_vm3, %v1667_v54, %v3758_v2 }
 0x193   : > { %v1417_v26 = vpop.permute.xlu0 %1416  ;;  %v3912_v19 = vsel %vm346_vm4, %v3750_v59, %v1883_v49  ;;  %v1893_v59 = vsel %vm338_vm0, %v4334_v35, %v3618_v10  ;;  %v214_v10 = vcombine.high %v210_v3, %v4241_v20 }
 0x194   : > { %v1459_v14 = vsel %vm346_vm4, %v3753_v6, %v1417_v26  ;;  %331 = vrot.lane.b32.xlu1 %v277_v43, %s2525_s5  ;;  %v1894_v2 = vsel %vm340_vm1, %v1893_v59, %v4335_v12 }
 0x195   : > { %295 = vrot.lane.b32.xlu0 %v203_v45, %s2523_s3  ;;  %v1895_v52 = vsel %vm342_vm2, %v1894_v2, %v3773_v41  ;;  %s2457_s3 = sshll.u32 %s2527_s30, 4  ;;  %s2458_s3 = int_to_ptr.vmem [resolvable:$false] %s2457_s3 }
 0x196   : > { %v2101_v6 = vpop.permute.xlu1 %2100  ;;  %p2460_p0 = scmp.lt.s32.totalorder %s4120_s23, %s2458_s3 }
 0x197   : > { %v1627_v56 = vpop.permute.xlu0 %1626  ;;  %v3932_v13 = vsel %vm344_vm3, %v3764_v53, %v2101_v6  ;;  %v573_v53 = vsel %vm338_vm0, %v4336_v39, %v3824_v25 }
 0x198   : > { %v1669_v1 = vsel %vm346_vm4, %v1668_v23, %v1627_v56  ;;  %303 = vrot.lane.b32.xlu1 %v210_v3, %s2525_s5  ;;  %v4337_v3 = vld [vmem:[#allocation14_spill] sm:$0xff] }
 0x199   : > { %538 = vrot.lane.b32.xlu0 %v445_v62, %s2525_s5 }
 0x19a   : > { %v523_v0 = vpop.permute.xlu1 %522 }
 0x19b   : > { %v1851_v30 = vpop.permute.xlu0 %1850  ;;  %v574_v15 = vsel %vm340_vm1, %v573_v53, %v523_v0 }
 0x19c   : > { %v1896_v61 = vsel %vm344_vm3, %v1895_v52, %v1851_v30  ;;  %307 = vrot.lane.b32.xlu1 %v214_v10, %s2526_s6 }
 0x19d   : > { %299 = vrot.lane.b32.xlu0 %v213_v46, %s2524_s4  ;;  %s2459_s4 = scalar_lea.vmem %s2458_s3, 1024 }
 0x19e   : > { %v757_v29 = vpop.permute.xlu1 %756  ;;  %p2461_p1 = scmp.lt.s32.totalorder %s2459_s4, %s2453_s13 }
 0x19f   : > { %v2069_v28 = vpop.permute.xlu0 %2068  ;;  %v3953_v41 = vsel %vm346_vm4, %v3858_v18, %v757_v29 }
 0x1a0   : > { %v2117_v25 = vsel %vm342_vm2, %v3802_v40, %v2069_v28  ;;  %p2462_p2 = por %p2461_p1, %p2460_p0 }
 0x1a1   : > { %542 = vrot.lane.b32.xlu0 %v449_v60, %s2526_s6 }
 0x1a2   : > { %v967_v9 = vpop.permute.xlu1 %966  ;;  %p2463_p3 = pnand %p2462_p2, %p2456_p13 }
 0x1a3   : > { %v312_v7 = vpop.permute.xlu0 %311  ;;  %v3960_v21 = vsel %vm346_vm4, %v1008_v48, %v967_v9 }
 0x1a4   : > { %v352_v4 = vsel %vm338_vm0, %v4337_v3, %v312_v7 }
 0x1a5   : > { %335 = vrot.lane.b32.xlu0 %v281_v57, %s2526_s6 }
 0x1a6   : > { %v1191_v37 = vpop.permute.xlu1 %1190 }
 0x1a7   : > { %v555_v50 = vpop.permute.xlu0 %554  ;;  %v3964_v38 = vsel %vm344_vm3, %v1235_v55, %v1191_v37 }
 0x1a8   : > { %v582_v18 = vsel %vm342_vm2, %v3780_v51, %v555_v50 }
 0x1aa   : > { %v1421_v40 = vpop.permute.xlu1 %1420 }
 0x1ab   : > { %v789_v34 = vpop.permute.xlu0 %788  ;;  %v1460_v17 = vsel %vm348_vm5, %v1459_v14, %v1421_v40 }
 0x1ac   : > { %v807_v20 = vsel %vm348_vm5, %v3799_v42, %v789_v34 }
 0x1ae   : > { %v1631_v27 = vpop.permute.xlu1 %1630 }
 0x1af   : > { %v999_v48 = vpop.permute.xlu0 %998  ;;  %v1670_v47 = vsel %vm348_vm5, %v1669_v1, %v1631_v27 }
 0x1b0   : > { %v1017_v8 = vsel %vm348_vm5, %v3827_v44, %v999_v48 }
 0x1b2   : > { %v1855_v11 = vpop.permute.xlu1 %1854 }
 0x1b3   : > { %v1223_v55 = vpop.permute.xlu0 %1222  ;;  %v1897_v36 = vsel %vm346_vm4, %v1896_v61, %v1855_v11 }
 0x1b4   : > { %v3977_v51 = vsel %vm346_vm4, %v3855_v5, %v1223_v55 }
 0x1b6   : > { %v2073_v32 = vpop.permute.xlu1 %2072 }
 0x1b7   : > { %v1453_v45 = vpop.permute.xlu0 %1452  ;;  %v3980_v42 = vsel %vm344_vm3, %v2117_v25, %v2073_v32 }
 0x1b8   : > { %v3984_v24 = vsel %vm350_vm6, %v3876_v33, %v1453_v45 }
 0x1b9   : > { %v2156_v5 = vrot.slane %v3984_v24, 1 }
 0x1ba   : > { %v3986_v44 = vpop.permute.xlu1 %283 }
 0x1bb   : > { %v1663_v43 = vpop.permute.xlu0 %1662 }
 0x1bc   : > { %v1678_v58 = vsel %vm350_vm6, %v3892_v16, %v1663_v43 }
 0x1bd   : > { %v2162_v31 = vrot.slane %v1678_v58, 6 }
 0x1be   : > { %v527_v49 = vpop.permute.xlu1 %526 }
 0x1bf   : > { %v1887_v22 = vpop.permute.xlu0 %1886  ;;  %v2188_v26 = vsel %vm2186_vm7, %v2156_v5, %v2162_v31  ;;  %v3995_v14 = vsel %vm342_vm2, %v574_v15, %v527_v49 }
 0x1c0   : > { %v1905_v25 = vsel %vm348_vm5, %v3912_v19, %v1887_v22 }
 0x1c2   : > { %v761_v63 = vpop.permute.xlu1 %760 }
 0x1c3   : > { %v2105_v33 = vpop.permute.xlu0 %2104 }
 0x1c4   : > { %v2126_v55 = vsel %vm346_vm4, %v3932_v13, %v2105_v33 }
 0x1c6   : > { %v971_v16 = vpop.permute.xlu1 %970 }
 0x1c7   : > { %v316_v54 = vpop.permute.xlu0 %315  ;;  %v1010_v45 = vsel %vm348_vm5, %v3960_v21, %v971_v16 }
 0x1c8   : > { %v4000_v35 = vsel %vm340_vm1, %v352_v4, %v316_v54 }
 0x1ca   : > { %v4002_v23 = vpop.permute.xlu1 %1194 }
 0x1cb   : > { %v559_v59 = vpop.permute.xlu0 %558 }
 0x1cc   : > { %v4005_v6 = vsel %vm344_vm3, %v582_v18, %v559_v59 }
 0x1ce   : > { %v1425_v62 = vpop.permute.xlu1 %1424 }
 0x1cf   : > { %v793_v56 = vpop.permute.xlu0 %792  ;;  %v4016_v30 = vsel %vm350_vm6, %v1460_v17, %v1425_v62 }
 0x1d0   : > { %v4008_v1 = vsel %vm350_vm6, %v807_v20, %v793_v56  ;;  %v2155_v28 = vrot.slane %v4016_v30, 1 }
 0x1d1   : > { %v2138_v2 = vrot.slane %v4008_v1, 2 }
 0x1d2   : > { %v1859_v10 = vpop.permute.xlu1 %1858 }
 0x1d3   : > { %v1003_v46 = vpop.permute.xlu0 %1002  ;;  %v1898_v19 = vsel %vm348_vm5, %v1897_v36, %v1859_v10 }
 0x1d4   : > { %v1018_v12 = vsel %vm350_vm6, %v1017_v8, %v1003_v46  ;;  %v800_v8 = vsel %vm348_vm5, %v3953_v41, %v761_v63 }
 0x1d5   : > { %v2144_v52 = vrot.slane %v1018_v12, 7 }
 0x1d6   : > { %v2077_v53 = vpop.permute.xlu1 %2076 }
 0x1d7   : > { %v1227_v39 = vpop.permute.xlu0 %1226  ;;  %v2179_v0 = vsel %vm2177_vm8, %v2138_v2, %v2144_v52 }
 0x1d8   : > { %v1245_v21 = vsel %vm348_vm5, %v3977_v51, %v1227_v39  ;;  %v2119_v51 = vsel %vm346_vm4, %v3980_v42, %v2077_v53  ;;  %v1237_v42 = vsel %vm346_vm4, %v3964_v38, %v4002_v23  ;;  %v4338_v38 = vld [vmem:[#allocation26_spill] sm:$0xff] }
 0x1d9   : > { %v339_v23 = vsel %vm338_vm0, %v4338_v38, %v3986_v44 }
 0x1da   : > { %v4018_v61 = vpop.permute.xlu1 %287 }
 0x1db   : > { %v1635_v15 = vpop.permute.xlu0 %1634 }
 0x1dc   : > { %v1671_v29 = vsel %vm350_vm6, %v1670_v47, %v1635_v15 }
 0x1dd   : > { %v2161_v60 = vrot.slane %v1671_v29, 6 }
 0x1de   : > { %v4024_v9 = vpop.permute.xlu1 %530 }
 0x1df   : > { %v1891_v57 = vpop.permute.xlu0 %1890  ;;  %v2187_v7 = vsel %vm2186_vm7, %v2155_v28, %v2161_v60 }
 0x1e0   : > { %v1906_v37 = vsel %vm350_vm6, %v1905_v25, %v1891_v57 }
 0x1e1   : > { %v2168_v50 = vrot.slane %v1906_v37, 3  ;;  %v341_v37 = vsel %vm340_vm1, %v339_v23, %v4018_v61 }
 0x1e2   : > { %v765_v40 = vpop.permute.xlu1 %764 }
 0x1e3   : > { %v2109_v18 = vpop.permute.xlu0 %2108  ;;  %v2191_v34 = vsel %vm2189_vm9, %v2188_v26, %v2168_v50  ;;  %v4042_v32 = vsel %vm350_vm6, %v800_v8, %v765_v40 }
 0x1e4   : > { %v2127_v36 = vsel %vm348_vm5, %v2126_v55, %v2109_v18  ;;  %v2137_v49 = vrot.slane %v4042_v32, 2 }
 0x1e6   : > { %v1199_v20 = vpop.permute.xlu1 %1198 }
 0x1e7   : > { %v4031_v17 = vpop.permute.xlu0 %319 }
 0x1ea   : > { %v1863_v48 = vpop.permute.xlu1 %1862 }
 0x1eb   : > { %v4034_v27 = vpop.permute.xlu0 %562  ;;  %v1899_v47 = vsel %vm350_vm6, %v1898_v19, %v1863_v48 }
 0x1ec   : > { %v2167_v11 = vrot.slane %v1899_v47, 3 }
 0x1ee   : > { %v2113_v58 = vpop.permute.xlu1 %2112  ;;  %v2190_v31 = vsel %vm2189_vm9, %v2187_v7, %v2167_v11  ;;  %v354_v11 = vsel %vm342_vm2, %v4000_v35, %v4031_v17 }
 0x1ef   : > { %v975_v43 = vpop.permute.xlu0 %974  ;;  %v2128_v41 = vsel %vm350_vm6, %v2127_v36, %v2113_v58 }
 0x1f0   : > { %v1011_v22 = vsel %vm350_vm6, %v1010_v45, %v975_v43  ;;  %2370 = vmatprep.subr.msk.mxu0 %vm2171_vm10, %v2128_v41  ;;  %2380 = vmatprep.subr.msk.mxu1 %vm2171_vm10, %v2128_v41 }
 0x1f1   : > { %v2143_v13 = vrot.slane %v1011_v22, 7 }
 0x1f2   : > { %v324_v33 = vpop.permute.xlu1 %323 }
 0x1f3   : > { %v1231_v26 = vpop.permute.xlu0 %1230  ;;  %v2178_v63 = vsel %vm2177_vm8, %v2137_v49, %v2143_v13  ;;  %v2192_v13 = vld [vmem:[%s4169_s1] sm:$0xff] }
 0x1f4   : > { %v1246_v3 = vsel %vm350_vm6, %v1245_v21, %v1231_v26  ;;  %v2193_v21 = vld [vmem:[%s4169_s1 + $0x8] sm:$0xff] }
 0x1f5   : > { %v2150_v4 = vrot.slane %v1246_v3, 4 }
 0x1f6   : > { %v567_v16 = vpop.permute.xlu1 %566 }
 0x1f7   : > { %v2081_v54 = vpop.permute.xlu0 %2080  ;;  %v2182_v59 = vsel %vm2180_vm11, %v2179_v0, %v2150_v4 }
 0x1f8   : > { %v2185_v56 = vsel %vm2183_vm12, %v2182_v59, %v2156_v5  ;;  %v2120_v62 = vsel %vm348_vm5, %v2119_v51, %v2081_v54  ;;  %v1238_v5 = vsel %vm348_vm5, %v1237_v42, %v1199_v20  ;;  %v584_v20 = vsel %vm346_vm4, %v4005_v6, %v4034_v27 }
 0x1f9   : > { %v585_v61 = vsel %vm348_vm5, %v584_v20, %v567_v16  ;;  %v355_v6 = vsel %vm344_vm3, %v354_v11, %v324_v33 }
 0x1fa   : > { %v2085_v10 = vpop.permute.xlu1 %2084 }
 0x1fb   : > { %v292_v46 = vpop.permute.xlu0 %291  ;;  %v2121_v12 = vsel %vm350_vm6, %v2120_v62, %v2085_v10 }
 0x1fc   : > { %2371 = vmatpush1.msk.msra.mxu0 %vm2171_vm10, %v2121_v12  ;;  %2384 = vmatpush1.msk.msra.mxu1 %vm2171_vm10, %v2121_v12  ;;  %v343_v18 = vsel %vm342_vm2, %v341_v37, %v292_v46 }
 0x1fd   : > { %2233 = vmatprep.subr.mxu0 %v2191_v34  ;;  %2381 = vmatprep.subr.mxu1 %v2191_v34 }
 0x1fe   : > { %2234 = vmatpush1.msra.mxu0 %v2190_v31  ;;  %2385 = vmatpush1.msra.mxu1 %v2190_v31  ;;  %v328_v24 = vpop.permute.xlu1 %327 }
 0x1ff   : > { %v535_v52 = vpop.permute.xlu0 %534  ;;  %2235 = vmatprep.subr.mxu0 %v2185_v56  ;;  %2382 = vmatprep.subr.mxu1 %v2185_v56  ;;  %v356_v55 = vsel %vm346_vm4, %v355_v6, %v328_v24 }
 0x202   : > { %v571_v53 = vpop.permute.xlu1 %570 }
 0x203   : > { %v1203_v39 = vpop.permute.xlu0 %1202 }
 0x204   : > { %v1239_v0 = vsel %vm350_vm6, %v1238_v5, %v1203_v39 }
 0x205   : > { %v2149_v15 = vrot.slane %v1239_v0, 4 }
 0x206   : > { %v332_v57 = vpop.permute.xlu1 %331 }
 0x207   : > { %v296_v29 = vpop.permute.xlu0 %295  ;;  %v2181_v60 = vsel %vm2180_vm11, %v2178_v63, %v2149_v15  ;;  %v357_v43 = vsel %vm348_vm5, %v356_v55, %v332_v57 }
 0x208   : > { %v2184_v25 = vsel %vm2183_vm12, %v2181_v60, %v2155_v28  ;;  %v345_v40 = vsel %vm344_vm3, %v343_v18, %v296_v29  ;;  %v576_v28 = vsel %vm344_vm3, %v3995_v14, %v4024_v9  ;;  %v586_v14 = vsel %vm350_vm6, %v585_v61, %v571_v53 }
 0x209   : > { %2236 = vmatpush1.msra.mxu0 %v2184_v25  ;;  %2386 = vmatpush1.msra.mxu1 %v2184_v25  ;;  %v577_v44 = vsel %vm346_vm4, %v576_v28, %v535_v52  ;;  %v2132_v36 = vrot.slane %v586_v14, 5 }
 0x20a   : > { %v304_v50 = vpop.permute.xlu1 %303 }
 0x20b   : > { %v539_v7 = vpop.permute.xlu0 %538 }
 0x20c   : > { %v578_v19 = vsel %vm348_vm5, %v577_v44, %v539_v7 }
 0x20e   : > { %v308_v47 = vpop.permute.xlu1 %307 }
 0x20f   : > { %v300_v34 = vpop.permute.xlu0 %299 }
 0x210   : > { %v347_v30 = vsel %vm346_vm4, %v345_v40, %v300_v34 }
 0x211   : > { %v349_v48 = vsel %vm348_vm5, %v347_v30, %v304_v50 }
 0x212   : > { %v351_v45 = vsel %vm350_vm6, %v349_v48, %v308_v47 }
 0x213   : > { %v543_v8 = vpop.permute.xlu0 %542 }
 0x214   : > { %v579_v9 = vsel %vm350_vm6, %v578_v19, %v543_v8 }
 0x215   : > { %v2131_v27 = vrot.slane %v579_v9, 5 }
 0x217   : > { %v336_v58 = vpop.permute.xlu0 %335  ;;  %v2172_v31 = vsel %vm2171_vm10, %v351_v45, %v2131_v27 }
 0x218   : > { %v358_v35 = vsel %vm350_vm6, %v357_v43, %v336_v58  ;;  %v2175_v17 = vsel %vm2174_vm13, %v2172_v31, %v2137_v49 }
 0x219   : > { %v2173_v22 = vsel %vm2171_vm10, %v358_v35, %v2132_v36 }
 0x21a   : > { %v2176_v41 = vsel %vm2174_vm13, %v2173_v22, %v2138_v2 }
 0x21b   : > { %2237 = vmatprep.subr.mxu0 %v2176_v41  ;;  %2383 = vmatprep.subr.mxu1 %v2176_v41 }
 0x21c   : > { %2238 = vmatpush1.msra.mxu0 %v2175_v17  ;;  %2387 = vmatpush1.msra.mxu1 %v2175_v17 }
 0x21d   : > { %2372 = vmatmul.mubr.msk.f32.vlgmr.msra.gmra.mxu0 %vm2194_vm14, %v2192_v13  ;;  %2373 = vmatmul.mubr.msk.f32.vlgmr.msra.gmra.mxu1 %vm2194_vm14, %v2193_v21 }
 0x2dd   : > { %v2273_v1 = vpop.f32.mrf.mxu0  ;;  %v2279_v2 = vpop.f32.mrf.mxu1 }
 0x2de   : > { %2284 = vst [vmem:[%s136_s22] sm:$0xff] %v2273_v1  ;;  %2286 = vst [vmem:[%s136_s22 + $0x10] sm:$0xff] %v2279_v2 }
 0x2df   : > { %v2275_v32 = vpop.f32.mrf.mxu0  ;;  %v2281_v49 = vpop.f32.mrf.mxu1 }
 0x2e0   : > { %2285 = vst [vmem:[%s136_s22 + $0x8] sm:$0xff] %v2275_v32  ;;  %2287 = vst [vmem:[%s136_s22 + $0x18] sm:$0xff] %v2281_v49 }
 0x2e1   : > { %2466 = shalt.err (!%p2463_p3)
}
 0x2e2   : > { %s2467_s5 = scalar_lea.hbm %s4125_s27, 512  ;;  %s2471_s8 = scalar_lea.hbm %s4170_s2, 1024 }
 0x2e3   : > { %p2468_p4 = scmp.ne.s32.totalorder %s4125_s27, %s2467_s5  ;;  %p2472_p9 = scmp.lt.s32.totalorder %s4125_s27, %s4170_s2 }
 0x2e4   : > { %p2473_p10 = scmp.lt.s32.totalorder %s2471_s8, %s2467_s5 }
 0x2e5   : > { %p2469_p7 = pnand %p2468_p4, %p2582_p5 }
 0x2e6   : > { %p2474_p11 = por %p2473_p10, %p2472_p9 }
 0x2e7   : > { %p2470_p8 = pneg %p2469_p7 }
 0x2e9   : > { %p2475_p12 = pnand %p2474_p11, %p2470_p8 }
 0x2eb   : > { %2478 = shalt.err (!%p2475_p12)
}
 0x2ec   : > { %s2528_s17 = smov 256  }
 0x2ed   : > { %2389 = dma.vmem_to_hbm [thread:$0]  (%p2582_p5), %s4120_s23, 512, %s4125_s27, %s4127_s29, %s2528_s17, %s2528_s17, %s2520_s28  }
 0x2ee PF: > { %p2395_p13 = scmp.ge.s32.totalorder %s2513_s12, 2  ;;  %s2317_s21 = sand.u32 1, %s2501_s9  }
 0x2ef   : > { %s2318_s22 = scalar_lea.sflag [#allocation3], %s2317_s21 }
 0x2f0   : > { %p2392_p0 = pnand %p2395_p13, %p2586_p6 }
 0x2f2   : > { %p2393_p1 = pneg %p2392_p0 }
 0x2f4   : > { %2496 = dma.done.wait (%p2393_p1), %s2318_s22, 512  }
 0x2f5   : > { %2498 = vsyncadd (%p2393_p1), %s2318_s22, 4294966784  ;;  %p12_p2 = scmp.ge.s32.totalorder %s2569_s15, 4   ;;  %s4339_s9 = smov %s2505_s10 }
 0x2f6   : > { %s4340_s10 = smov %s2509_s11  ;;  %s4341_s11 = smov %s2580_s18 }
 0x2f7   : > { %s4342_s12 = smov %s2569_s15  ;;  %14 = sbr.rel (!%p12_p2) target bundleno = 3 (0x3), region = 63 }
 0x2fc   :  { %2323 = vsyncpa [#allocation3], 1 }
 0x2fd   :  { %2325 = vsyncpa [#allocation3 + $0x1], 1 }

</bundles_post_ra>
